<compile_context>
chip_gen: v6e
topology: v6e:2x2x1
jax: 0.10.0
libtpu: 0.0.40
codegen_flags: <defaults>
</compile_context>

<pallas_src>
import functools
import math

import jax
import jax.numpy as jnp
from jax.experimental import pallas as pl
from jax.experimental.pallas import tpu as pltpu

NEG_INF = -1e30


# --------------------------------- helpers -----------------------------------
def _pick_tile(dim, target, align):
    """Largest tile <= target that divides `dim` and is `align`-aligned; else full dim."""
    if dim <= target:
        return dim
    t = (target // align) * align
    while t >= align:
        if dim % t == 0:
            return t
        t -= align
    return dim


def _largest_divisor_leq(n, cap):
    cap = min(n, max(1, cap))
    for d in range(cap, 0, -1):
        if n % d == 0:
            return d
    return 1


@functools.lru_cache(maxsize=None)
def _vmem_limit_bytes():
    # v5e/v6e have 128 MiB VMEM, v7x only 64 MiB -> derive a per-generation budget
    # with headroom instead of a flat cap.
    try:
        cap = int(pltpu.get_tpu_info().vmem_capacity_bytes)
        return int(max(32 * 1024 * 1024,
                       min(cap - 16 * 1024 * 1024, 100 * 1024 * 1024)))
    except Exception:
        return 48 * 1024 * 1024  # safe everywhere (incl. v7x)


def _compiler_params(semantics):
    return pltpu.CompilerParams(dimension_semantics=semantics,
                                vmem_limit_bytes=_vmem_limit_bytes())


# ------------------- Fused QKV projection (+ head split) --------------------
def _qkv_proj_kernel(x_ref, w_ref, b_ref, q_ref, k_ref, v_ref, acc_ref, *, G, D):
    kt = pl.program_id(3)
    nk = pl.num_programs(3)

    @pl.when(kt == 0)
    def _init():
        acc_ref[...] = jnp.zeros_like(acc_ref)

    x = x_ref[...]                                    # (tm, tk) in compute dtype
    for gi in range(G):                               # static unroll over the head group
        # One dot per head with N = 3*D (q|k|v fused) -> 3x wider MXU tiles than N=D.
        acc_ref[gi] += jnp.dot(x, w_ref[gi], preferred_element_type=jnp.float32)

    @pl.when(kt == nk - 1)
    def _finalize():
        for gi in range(G):
            z = acc_ref[gi] + b_ref[gi]               # (tm, 3D) f32 + (1, 3D) bias
            q_ref[gi] = z[:, :D].astype(q_ref.dtype)
            k_ref[gi] = z[:, D:2 * D].astype(k_ref.dtype)
            v_ref[gi] = z[:, 2 * D:].astype(v_ref.dtype)


def qkv_projection(x, w_qkv, b_qkv, *, compute_dtype=jnp.bfloat16,
                   tm_target=256, tk_target=512, head_group_target=8):
    """x: (B,S,E); w_qkv: (H,E,3D); b_qkv: (H,1,3D) -> q, k, v each (B,H,S,D)."""
    B, S, E = x.shape
    H, _, D3 = w_qkv.shape
    D = D3 // 3
    G = _largest_divisor_leq(H, head_group_target)     # heads per grid step
    tm = _pick_tile(S, tm_target, 128)
    tk = _pick_tile(E, tk_target, 128)
    grid = (B, S // tm, H // G, E // tk)

    x = x.astype(compute_dtype)
    w_qkv = w_qkv.astype(compute_dtype)                # bf16 MXU operands, f32 accumulate
    b_qkv = b_qkv.astype(jnp.float32)

    out_sds = jax.ShapeDtypeStruct((B, H, S, D), compute_dtype)
    out_spec = pl.BlockSpec((None, G, tm, D), lambda b, i, g, kt: (b, g, i, 0))

    itemsize = jnp.dtype(compute_dtype).itemsize
    flops = 2 * B * S * E * 3 * E
    bytes_accessed = int(itemsize * ((H // G) * B * S * E          # x re-reads
                                     + (B * S // tm) * H * E * 3 * D  # weight re-reads
                                     + 3 * B * H * S * D))            # q/k/v writes

    kernel = functools.partial(_qkv_proj_kernel, G=G, D=D)
    return pl.pallas_call(
        kernel,
        out_shape=(out_sds, out_sds, out_sds),
        grid=grid,
        in_specs=[
            pl.BlockSpec((None, tm, tk), lambda b, i, g, kt: (b, i, kt)),
            pl.BlockSpec((G, tk, D3), lambda b, i, g, kt: (g, kt, 0)),
            pl.BlockSpec((G, 1, D3), lambda b, i, g, kt: (g, 0, 0)),
        ],
        out_specs=(out_spec, out_spec, out_spec),
        scratch_shapes=[pltpu.VMEM((G, tm, D3), jnp.float32)],
        compiler_params=_compiler_params(
            ("parallel", "parallel", "parallel", "arbitrary")),
        cost_estimate=pl.CostEstimate(flops=int(flops), transcendentals=0,
                                      bytes_accessed=bytes_accessed),
    )(x, w_qkv, b_qkv)


# ----------------- Flash-style causal attention (online softmax) ------------
def _flash_causal_kernel(q_ref, k_ref, v_ref, o_ref, *, tq, tkv, compute_dtype):
    i = pl.program_id(2)
    D = q_ref.shape[-1]
    n_diag = tq // tkv                      # static: kv tiles intersecting the diagonal
    n_full = i * n_diag                     # dynamic: fully-unmasked kv tiles
    q_start = i * tq

    q = q_ref[...]                          # (tq, D); softmax scale folded into Wq

    def kv_step(kv_idx, carry, masked):
        m_prev, l_prev, acc_prev = carry
        start = pl.multiple_of(kv_idx * tkv, tkv)
        k_t = k_ref[pl.ds(start, tkv), :]   # (tkv, D) -- already resident in VMEM
        v_t = v_ref[pl.ds(start, tkv), :]   # (tkv, D)
        s = jax.lax.dot_general(            # contract D with D: no k transpose needed
            q, k_t, (((1,), (1,)), ((), ())),
            preferred_element_type=jnp.float32)          # (tq, tkv) f32
        if masked:                          # only diagonal tiles pay for the mask
            row = q_start + jax.lax.broadcasted_iota(jnp.int32, (tq, 1), 0)
            col = start + jax.lax.broadcasted_iota(jnp.int32, (1, tkv), 1)
            s = jnp.where(row >= col, s, NEG_INF)
        m_new = jnp.maximum(m_prev, jnp.max(s, axis=-1, keepdims=True))
        alpha = jnp.exp(m_prev - m_new)
        p = jnp.exp(s - m_new)
        l_new = alpha * l_prev + jnp.sum(p, axis=-1, keepdims=True)
        acc_new = alpha * acc_prev + jax.lax.dot_general(
            p.astype(compute_dtype), v_t, (((1,), (0,)), ((), ())),
            preferred_element_type=jnp.float32)
        return m_new, l_new, acc_new

    carry = (jnp.full((tq, 1), NEG_INF, jnp.float32),
             jnp.zeros((tq, 1), jnp.float32),
             jnp.zeros((tq, D), jnp.float32))
    # Tiles strictly below the diagonal: no mask work, loop stops at the diagonal
    # (fully-masked tiles never run -- neither compute nor DMA).
    carry = jax.lax.fori_loop(0, n_full,
                              functools.partial(kv_step, masked=False), carry)
    # Diagonal tiles (static count), with triangular masking.
    for d in range(n_diag):
        carry = kv_step(n_full + d, carry, masked=True)

    m_i, l_i, acc = carry
    inv_l = pl.reciprocal(l_i, approx=True)
    inv_l = inv_l * (2.0 - l_i * inv_l)     # one Newton step -> ~f32-accurate reciprocal
    o_ref[...] = (acc * inv_l).astype(o_ref.dtype)


def causal_flash_attention(q, k, v, *, compute_dtype=jnp.bfloat16,
                           tq_target=256, tkv_target=256):
    """q, k, v: (B,H,S,D) -> (B,H,S,D), causal.  q is pre-scaled (scale in Wq)."""
    B, H, S, D = q.shape
    q = q.astype(compute_dtype)
    k = k.astype(compute_dtype)
    v = v.astype(compute_dtype)
    tq = _pick_tile(S, tq_target, 128)
    tkv = _pick_tile(tq, tkv_target, 128)   # tkv divides tq by construction
    grid = (B, H, S // tq)

    q_spec = pl.BlockSpec((None, None, tq, D), lambda b, h, i: (b, h, i, 0))
    # Full-sequence K/V blocks, constant in i -> VMEM-resident per (batch, head).
    kv_spec = pl.BlockSpec((None, None, S, D), lambda b, h, i: (b, h, 0, 0))

    itemsize = jnp.dtype(compute_dtype).itemsize
    flops = 2 * B * H * S * S * D                 # QK^T + PV with causal ~halving
    bytes_accessed = int(itemsize * 4 * B * H * S * D)
    kernel = functools.partial(_flash_causal_kernel, tq=tq, tkv=tkv,
                               compute_dtype=compute_dtype)

    return pl.pallas_call(
        kernel,
        out_shape=jax.ShapeDtypeStruct((B, H, S, D), compute_dtype),
        grid=grid,
        in_specs=[q_spec, kv_spec, kv_spec],
        out_specs=q_spec,
        compiler_params=_compiler_params(("parallel", "parallel", "parallel")),
        cost_estimate=pl.CostEstimate(flops=int(flops),
                                      transcendentals=int(B * H * S * S // 2),
                                      bytes_accessed=bytes_accessed),
    )(q, k, v)


# ------------------- Fused output projection (head merge) -------------------
def _out_proj_kernel(a_ref, w_ref, b_ref, y_ref, acc_ref, *, G):
    g = pl.program_id(3)
    ng = pl.num_programs(3)

    @pl.when(g == 0)
    def _init():
        acc_ref[...] = jnp.zeros_like(acc_ref)

    # G back-to-back dots (total contraction depth G*D per grid step), one acc RMW.
    part = jnp.dot(a_ref[0], w_ref[0], preferred_element_type=jnp.float32)
    for gi in range(1, G):
        part += jnp.dot(a_ref[gi], w_ref[gi], preferred_element_type=jnp.float32)
    acc_ref[...] += part

    @pl.when(g == ng - 1)
    def _finalize():
        y_ref[...] = (acc_ref[...] + b_ref[...]).astype(y_ref.dtype)


def out_projection(attn, w_out, b_out, *, out_dtype, compute_dtype=jnp.bfloat16,
                   tm_target=256, tn_target=256, contract_target=256):
    """attn: (B,H,S,D); w_out: (H,D,E); b_out: (1,E) -> y: (B,S,E)."""
    B, H, S, D = attn.shape
    _, _, E = w_out.shape
    G = _largest_divisor_leq(H, max(1, contract_target // D))  # heads per grid step
    tm = _pick_tile(S, tm_target, 128)
    tn = _pick_tile(E, tn_target, 128)
    grid = (B, S // tm, E // tn, H // G)

    attn = attn.astype(compute_dtype)
    w_out = w_out.astype(compute_dtype)
    b_out = b_out.astype(jnp.float32)

    itemsize = jnp.dtype(compute_dtype).itemsize
    flops = 2 * B * S * E * E
    bytes_accessed = int(itemsize * ((E // tn) * B * H * S * D
                                     + (B * S // tm) * H * D * E)
                         + jnp.dtype(out_dtype).itemsize * B * S * E)

    kernel = functools.partial(_out_proj_kernel, G=G)
    return pl.pallas_call(
        kernel,
        out_shape=jax.ShapeDtypeStruct((B, S, E), out_dtype),
        grid=grid,
        in_specs=[
            pl.BlockSpec((None, G, tm, D), lambda b, i, n, g: (b, g, i, 0)),
            pl.BlockSpec((G, D, tn), lambda b, i, n, g: (g, 0, n)),
            pl.BlockSpec((1, tn), lambda b, i, n, g: (0, n)),
        ],
        out_specs=pl.BlockSpec((None, tm, tn), lambda b, i, n, g: (b, i, n)),
        scratch_shapes=[pltpu.VMEM((tm, tn), jnp.float32)],
        compiler_params=_compiler_params(
            ("parallel", "parallel", "parallel", "arbitrary")),
        cost_estimate=pl.CostEstimate(flops=int(flops), transcendentals=0,
                                      bytes_accessed=bytes_accessed),
    )(attn, w_out, b_out)


# ------------------------------- Full module ---------------------------------
@functools.partial(jax.jit, static_argnames=("compute_dtype",))
def _forward(x, qkv_w, qkv_b, out_w, out_b, *, compute_dtype):
    q, k, v = qkv_projection(x, qkv_w, qkv_b, compute_dtype=compute_dtype)
    o = causal_flash_attention(q, k, v, compute_dtype=compute_dtype)
    return out_projection(o, out_w, out_b, out_dtype=x.dtype,
                          compute_dtype=compute_dtype)


class CausalSelfAttention:
    """JAX/Pallas port of the PyTorch CausalSelfAttention module (eval mode)."""

    def __init__(self, embed_dim, num_heads, dropout=0.1, key=None,
                 compute_dtype=jnp.bfloat16):
        assert embed_dim % num_heads == 0
        self.embed_dim = embed_dim
        self.num_heads = num_heads
        self.head_dim = embed_dim // num_heads
        self.dropout = dropout            # TODO(synk): dropout not applied (eval mode)
        self.compute_dtype = compute_dtype

        if key is None:
            key = jax.random.PRNGKey(0)
        k1, k2, k3, k4 = jax.random.split(key, 4)
        E, H, D = embed_dim, num_heads, self.head_dim
        bound = 1.0 / math.sqrt(E)        # nn.Linear-style U(-1/sqrt(in), 1/sqrt(in))

        qkv_w = jax.random.uniform(k1, (E, 3 * E), jnp.float32, -bound, bound)
        qkv_b = jax.random.uniform(k2, (3 * E,), jnp.float32, -bound, bound)
        out_w = jax.random.uniform(k3, (E, E), jnp.float32, -bound, bound)
        out_b = jax.random.uniform(k4, (E,), jnp.float32, -bound, bound)

        # Kernel-friendly layouts:
        #   qkv_w: (H, E, 3D)  -- per head, [q | k | v] fused along the last axis
        #   qkv_b: (H, 1, 3D)
        #   out_w: (H, D, E)
        #   out_b: (1, E)
        qkv_w = qkv_w.reshape(E, 3, H, D).transpose(2, 0, 1, 3).reshape(H, E, 3 * D)
        qkv_b = qkv_b.reshape(3, H, D).transpose(1, 0, 2).reshape(H, 1, 3 * D)
        # Fold the 1/sqrt(D) softmax scale into the Q projection (exactly equivalent).
        scale = 1.0 / math.sqrt(D)
        qkv_w = qkv_w.at[:, :, :D].multiply(scale)
        qkv_b = qkv_b.at[:, :, :D].multiply(scale)

        self.qkv_w = qkv_w
        self.qkv_b = qkv_b
        self.out_w = out_w.reshape(H, D, E)
        self.out_b = out_b.reshape(1, E)

    def __call__(self, x):
        B, S, E = x.shape
        assert E == self.embed_dim
        return _forward(x, self.qkv_w, self.qkv_b, self.out_w, self.out_b,
                        compute_dtype=self.compute_dtype)


# ------------------------------ Pure-JAX reference ---------------------------
def _reference_forward(x, m):
    """f32 reference using the module's (already scale-folded) weight layouts."""
    H, E, D3 = m.qkv_w.shape
    D = D3 // 3
    qkv = jnp.einsum('bse,hef->bhsf', x, m.qkv_w) + m.qkv_b[None]     # (B,H,S,3D)
    q, k, v = qkv[..., :D], qkv[..., D:2 * D], qkv[..., 2 * D:]
    s = jnp.einsum('bhqd,bhkd->bhqk', q, k)          # scale already folded into Wq/bq
    S = x.shape[1]
    mask = jnp.tril(jnp.ones((S, S), dtype=bool))
    s = jnp.where(mask, s, -jnp.inf)
    p = jax.nn.softmax(s, axis=-1)
    o = jnp.einsum('bhqk,bhkd->bhqd', p, v)
    return jnp.einsum('bhsd,hde->bse', o, m.out_w) + m.out_b


# ---------------------------------- Main -------------------------------------
if __name__ == "__main__":
    key = jax.random.PRNGKey(0)
    kx, kp, kx2, kp2 = jax.random.split(key, 4)

    # ---- Small smoke test (full-block / degenerate-tile path) ----
    B, S, E, H = 2, 16, 32, 4
    x = jax.random.normal(kx, (B, S, E), dtype=jnp.float32)

    attn_bf16 = CausalSelfAttention(embed_dim=E, num_heads=H, dropout=0.1, key=kp)
    y = jax.block_until_ready(attn_bf16(x))
    assert y.shape == (B, S, E), y.shape
    assert bool(jnp.all(jnp.isfinite(y)))
    err = float(jnp.max(jnp.abs(y - _reference_forward(x, attn_bf16))))
    assert err < 5e-2, f"bf16 path max abs err {err}"

    attn_f32 = CausalSelfAttention(embed_dim=E, num_heads=H, dropout=0.1, key=kp,
                                   compute_dtype=jnp.float32)
    y32 = jax.block_until_ready(attn_f32(x))
    err32 = float(jnp.max(jnp.abs(y32 - _reference_forward(x, attn_f32))))
    assert err32 < 2e-3, f"f32 path max abs err {err32}"

    # ---- Tiled-path test: multiple q/kv tiles, causal loop bound, K-accumulation,
    #      head groups (D=64, S//tq=2, E//tk=2, H//G=2) ----
    B2, S2, E2, H2 = 1, 512, 1024, 16
    x2 = jax.random.normal(kx2, (B2, S2, E2), dtype=jnp.float32)
    attn2 = CausalSelfAttention(embed_dim=E2, num_heads=H2, dropout=0.1, key=kp2)
    y2 = jax.block_until_ready(attn2(x2))
    assert y2.shape == (B2, S2, E2), y2.shape
    assert bool(jnp.all(jnp.isfinite(y2)))
    err2 = float(jnp.max(jnp.abs(y2 - _reference_forward(x2, attn2))))
    assert err2 < 5e-2, f"tiled bf16 path max abs err {err2}"

    print("KERNEL_OK")
</pallas_src>

<mosaic_0001>
module attributes {stable_mosaic.version = 11 : i64} {
  func.func @_qkv_proj_kernel(%arg0: i32, %arg1: i32, %arg2: i32, %arg3: i32, %arg4: memref<1x16x32xbf16, #tpu.memory_space<vmem>>, %arg5: memref<4x32x24xbf16, #tpu.memory_space<vmem>>, %arg6: memref<4x1x24xf32, #tpu.memory_space<vmem>>, %arg7: memref<1x4x16x8xbf16, #tpu.memory_space<vmem>>, %arg8: memref<1x4x16x8xbf16, #tpu.memory_space<vmem>>, %arg9: memref<1x4x16x8xbf16, #tpu.memory_space<vmem>>, %arg10: memref<4x16x24xf32, #tpu.memory_space<vmem>>) attributes {dimension_semantics = [#tpu.dimension_semantics<parallel>, #tpu.dimension_semantics<parallel>, #tpu.dimension_semantics<parallel>, #tpu.dimension_semantics<arbitrary>], iteration_bounds = array<i64: 2, 1, 1, 1>, scalar_prefetch = 0 : i64, scratch_operands = 1 : i64, tpu.core_type = #tpu.core_type<tc>, window_params = [{transform_indices = @transform_0, window_bounds = array<i64: 1, 16, 32>}, {transform_indices = @transform_1, window_bounds = array<i64: 4, 32, 24>}, {transform_indices = @transform_2, window_bounds = array<i64: 4, 1, 24>}, {transform_indices = @transform_3, window_bounds = array<i64: 1, 4, 16, 8>}, {transform_indices = @transform_4, window_bounds = array<i64: 1, 4, 16, 8>}, {transform_indices = @transform_5, window_bounds = array<i64: 1, 4, 16, 8>}]} {
    %c0_i32 = arith.constant 0 : i32
    %0 = arith.cmpi eq, %arg3, %c0_i32 : i32
    %1 = arith.extui %0 : i1 to i32
    %c0_i32_0 = arith.constant 0 : i32
    %2 = arith.cmpi ne, %1, %c0_i32_0 : i32
    scf.if %2 {
      %cst_41 = arith.constant 0.000000e+00 : f32
      %44 = vector.broadcast %cst_41 : f32 to vector<4x16x24xf32>
      %c0_42 = arith.constant 0 : index
      %c0_43 = arith.constant 0 : index
      %c0_44 = arith.constant 0 : index
      %45 = vector.load %arg10[%c0_42, %c0_43, %c0_44] : memref<4x16x24xf32, #tpu.memory_space<vmem>>, vector<4x16x24xf32>
      tpu.vector_store %arg10[%c0_42, %c0_43, %c0_44], %44 {strides = array<i32>} : memref<4x16x24xf32, #tpu.memory_space<vmem>>, vector<4x16x24xf32>,
    } else {
    }
    %c0 = arith.constant 0 : index
    %c0_1 = arith.constant 0 : index
    %c0_2 = arith.constant 0 : index
    %3 = vector.load %arg4[%c0, %c0_1, %c0_2] : memref<1x16x32xbf16, #tpu.memory_space<vmem>>, vector<1x16x32xbf16>
    %4 = vector.shape_cast %3 : vector<1x16x32xbf16> to vector<16x32xbf16>
    %c0_3 = arith.constant 0 : index
    %c0_4 = arith.constant 0 : index
    %c0_5 = arith.constant 0 : index
    %5 = vector.load %arg10[%c0_3, %c0_4, %c0_5] : memref<4x16x24xf32, #tpu.memory_space<vmem>>, vector<1x16x24xf32>
    %6 = vector.shape_cast %5 : vector<1x16x24xf32> to vector<16x24xf32>
    %c0_6 = arith.constant 0 : index
    %c0_7 = arith.constant 0 : index
    %c0_8 = arith.constant 0 : index
    %7 = vector.load %arg5[%c0_6, %c0_7, %c0_8] : memref<4x32x24xbf16, #tpu.memory_space<vmem>>, vector<1x32x24xbf16>
    %8 = vector.shape_cast %7 : vector<1x32x24xbf16> to vector<32x24xbf16>
    %cst = arith.constant dense<0.000000e+00> : vector<16x24xf32>
    %9 = tpu.matmul %4, %8, %cst {dimension_numbers = #tpu.dot_dimension_numbers<[1], [0], [0], [1], [0, 0, 1, 1], [], []>} : vector<16x32xbf16>, vector<32x24xbf16>, vector<16x24xf32> -> vector<16x24xf32>
    %10 = arith.addf %6, %9 : vector<16x24xf32>
    %c0_9 = arith.constant 0 : index
    %c0_10 = arith.constant 0 : index
    %c0_11 = arith.constant 0 : index
    %11 = vector.load %arg10[%c0_9, %c0_10, %c0_11] : memref<4x16x24xf32, #tpu.memory_space<vmem>>, vector<1x16x24xf32>
    %12 = vector.shape_cast %11 : vector<1x16x24xf32> to vector<16x24xf32>
    %13 = vector.shape_cast %10 : vector<16x24xf32> to vector<1x16x24xf32>
    tpu.vector_store %arg10[%c0_9, %c0_10, %c0_11], %13 {strides = array<i32>} : memref<4x16x24xf32, #tpu.memory_space<vmem>>, vector<1x16x24xf32>,
    %c1 = arith.constant 1 : index
    %c0_12 = arith.constant 0 : index
    %c0_13 = arith.constant 0 : index
    %14 = vector.load %arg10[%c1, %c0_12, %c0_13] : memref<4x16x24xf32, #tpu.memory_space<vmem>>, vector<1x16x24xf32>
    %15 = vector.shape_cast %14 : vector<1x16x24xf32> to vector<16x24xf32>
    %c1_14 = arith.constant 1 : index
    %c0_15 = arith.constant 0 : index
    %c0_16 = arith.constant 0 : index
    %16 = vector.load %arg5[%c1_14, %c0_15, %c0_16] : memref<4x32x24xbf16, #tpu.memory_space<vmem>>, vector<1x32x24xbf16>
    %17 = vector.shape_cast %16 : vector<1x32x24xbf16> to vector<32x24xbf16>
    %cst_17 = arith.constant dense<0.000000e+00> : vector<16x24xf32>
    %18 = tpu.matmul %4, %17, %cst_17 {dimension_numbers = #tpu.dot_dimension_numbers<[1], [0], [0], [1], [0, 0, 1, 1], [], []>} : vector<16x32xbf16>, vector<32x24xbf16>, vector<16x24xf32> -> vector<16x24xf32>
    %19 = arith.addf %15, %18 : vector<16x24xf32>
    %c1_18 = arith.constant 1 : index
    %c0_19 = arith.constant 0 : index
    %c0_20 = arith.constant 0 : index
    %20 = vector.load %arg10[%c1_18, %c0_19, %c0_20] : memref<4x16x24xf32, #tpu.memory_space<vmem>>, vector<1x16x24xf32>
    %21 = vector.shape_cast %20 : vector<1x16x24xf32> to vector<16x24xf32>
    %22 = vector.shape_cast %19 : vector<16x24xf32> to vector<1x16x24xf32>
    tpu.vector_store %arg10[%c1_18, %c0_19, %c0_20], %22 {strides = array<i32>} : memref<4x16x24xf32, #tpu.memory_space<vmem>>, vector<1x16x24xf32>,
    %c2 = arith.constant 2 : index
    %c0_21 = arith.constant 0 : index
    %c0_22 = arith.constant 0 : index
    %23 = vector.load %arg10[%c2, %c0_21, %c0_22] : memref<4x16x24xf32, #tpu.memory_space<vmem>>, vector<1x16x24xf32>
    %24 = vector.shape_cast %23 : vector<1x16x24xf32> to vector<16x24xf32>
    %c2_23 = arith.constant 2 : index
    %c0_24 = arith.constant 0 : index
    %c0_25 = arith.constant 0 : index
    %25 = vector.load %arg5[%c2_23, %c0_24, %c0_25] : memref<4x32x24xbf16, #tpu.memory_space<vmem>>, vector<1x32x24xbf16>
    %26 = vector.shape_cast %25 : vector<1x32x24xbf16> to vector<32x24xbf16>
    %cst_26 = arith.constant dense<0.000000e+00> : vector<16x24xf32>
    %27 = tpu.matmul %4, %26, %cst_26 {dimension_numbers = #tpu.dot_dimension_numbers<[1], [0], [0], [1], [0, 0, 1, 1], [], []>} : vector<16x32xbf16>, vector<32x24xbf16>, vector<16x24xf32> -> vector<16x24xf32>
    %28 = arith.addf %24, %27 : vector<16x24xf32>
    %c2_27 = arith.constant 2 : index
    %c0_28 = arith.constant 0 : index
    %c0_29 = arith.constant 0 : index
    %29 = vector.load %arg10[%c2_27, %c0_28, %c0_29] : memref<4x16x24xf32, #tpu.memory_space<vmem>>, vector<1x16x24xf32>
    %30 = vector.shape_cast %29 : vector<1x16x24xf32> to vector<16x24xf32>
    %31 = vector.shape_cast %28 : vector<16x24xf32> to vector<1x16x24xf32>
    tpu.vector_store %arg10[%c2_27, %c0_28, %c0_29], %31 {strides = array<i32>} : memref<4x16x24xf32, #tpu.memory_space<vmem>>, vector<1x16x24xf32>,
    %c3 = arith.constant 3 : index
    %c0_30 = arith.constant 0 : index
    %c0_31 = arith.constant 0 : index
    %32 = vector.load %arg10[%c3, %c0_30, %c0_31] : memref<4x16x24xf32, #tpu.memory_space<vmem>>, vector<1x16x24xf32>
    %33 = vector.shape_cast %32 : vector<1x16x24xf32> to vector<16x24xf32>
    %c3_32 = arith.constant 3 : index
    %c0_33 = arith.constant 0 : index
    %c0_34 = arith.constant 0 : index
    %34 = vector.load %arg5[%c3_32, %c0_33, %c0_34] : memref<4x32x24xbf16, #tpu.memory_space<vmem>>, vector<1x32x24xbf16>
    %35 = vector.shape_cast %34 : vector<1x32x24xbf16> to vector<32x24xbf16>
    %cst_35 = arith.constant dense<0.000000e+00> : vector<16x24xf32>
    %36 = tpu.matmul %4, %35, %cst_35 {dimension_numbers = #tpu.dot_dimension_numbers<[1], [0], [0], [1], [0, 0, 1, 1], [], []>} : vector<16x32xbf16>, vector<32x24xbf16>, vector<16x24xf32> -> vector<16x24xf32>
    %37 = arith.addf %33, %36 : vector<16x24xf32>
    %c3_36 = arith.constant 3 : index
    %c0_37 = arith.constant 0 : index
    %c0_38 = arith.constant 0 : index
    %38 = vector.load %arg10[%c3_36, %c0_37, %c0_38] : memref<4x16x24xf32, #tpu.memory_space<vmem>>, vector<1x16x24xf32>
    %39 = vector.shape_cast %38 : vector<1x16x24xf32> to vector<16x24xf32>
    %40 = vector.shape_cast %37 : vector<16x24xf32> to vector<1x16x24xf32>
    tpu.vector_store %arg10[%c3_36, %c0_37, %c0_38], %40 {strides = array<i32>} : memref<4x16x24xf32, #tpu.memory_space<vmem>>, vector<1x16x24xf32>,
    %c0_i32_39 = arith.constant 0 : i32
    %41 = arith.cmpi eq, %arg3, %c0_i32_39 : i32
    %42 = arith.extui %41 : i1 to i32
    %c0_i32_40 = arith.constant 0 : i32
    %43 = arith.cmpi ne, %42, %c0_i32_40 : i32
    scf.if %43 {
      %c0_41 = arith.constant 0 : index
      %c0_42 = arith.constant 0 : index
      %c0_43 = arith.constant 0 : index
      %44 = vector.load %arg10[%c0_41, %c0_42, %c0_43] : memref<4x16x24xf32, #tpu.memory_space<vmem>>, vector<1x16x24xf32>
      %45 = vector.shape_cast %44 : vector<1x16x24xf32> to vector<16x24xf32>
      %c0_44 = arith.constant 0 : index
      %c0_45 = arith.constant 0 : index
      %c0_46 = arith.constant 0 : index
      %46 = vector.load %arg6[%c0_44, %c0_45, %c0_46] : memref<4x1x24xf32, #tpu.memory_space<vmem>>, vector<1x1x24xf32>
      %47 = vector.shape_cast %46 : vector<1x1x24xf32> to vector<1x24xf32>
      %48 = vector.broadcast %47 : vector<1x24xf32> to vector<16x24xf32>
      %49 = arith.addf %45, %48 : vector<16x24xf32>
      %50 = vector.extract_strided_slice %49 {offsets = [0, 0], sizes = [16, 8], strides = [1, 1]} : vector<16x24xf32> to vector<16x8xf32>
      %51 = arith.truncf %50 : vector<16x8xf32> to vector<16x8xbf16>
      %c0_47 = arith.constant 0 : index
      %c0_48 = arith.constant 0 : index
      %c0_49 = arith.constant 0 : index
      %c0_50 = arith.constant 0 : index
      %52 = vector.load %arg7[%c0_47, %c0_48, %c0_49, %c0_50] : memref<1x4x16x8xbf16, #tpu.memory_space<vmem>>, vector<1x1x16x8xbf16>
      %53 = vector.shape_cast %52 : vector<1x1x16x8xbf16> to vector<16x8xbf16>
      %54 = vector.shape_cast %51 : vector<16x8xbf16> to vector<1x1x16x8xbf16>
      tpu.vector_store %arg7[%c0_47, %c0_48, %c0_49, %c0_50], %54 {strides = array<i32>} : memref<1x4x16x8xbf16, #tpu.memory_space<vmem>>, vector<1x1x16x8xbf16>,
      %55 = vector.extract_strided_slice %49 {offsets = [0, 8], sizes = [16, 8], strides = [1, 1]} : vector<16x24xf32> to vector<16x8xf32>
      %56 = arith.truncf %55 : vector<16x8xf32> to vector<16x8xbf16>
      %c0_51 = arith.constant 0 : index
      %c0_52 = arith.constant 0 : index
      %c0_53 = arith.constant 0 : index
      %c0_54 = arith.constant 0 : index
      %57 = vector.load %arg8[%c0_51, %c0_52, %c0_53, %c0_54] : memref<1x4x16x8xbf16, #tpu.memory_space<vmem>>, vector<1x1x16x8xbf16>
      %58 = vector.shape_cast %57 : vector<1x1x16x8xbf16> to vector<16x8xbf16>
      %59 = vector.shape_cast %56 : vector<16x8xbf16> to vector<1x1x16x8xbf16>
      tpu.vector_store %arg8[%c0_51, %c0_52, %c0_53, %c0_54], %59 {strides = array<i32>} : memref<1x4x16x8xbf16, #tpu.memory_space<vmem>>, vector<1x1x16x8xbf16>,
      %60 = vector.extract_strided_slice %49 {offsets = [0, 16], sizes = [16, 8], strides = [1, 1]} : vector<16x24xf32> to vector<16x8xf32>
      %61 = arith.truncf %60 : vector<16x8xf32> to vector<16x8xbf16>
      %c0_55 = arith.constant 0 : index
      %c0_56 = arith.constant 0 : index
      %c0_57 = arith.constant 0 : index
      %c0_58 = arith.constant 0 : index
      %62 = vector.load %arg9[%c0_55, %c0_56, %c0_57, %c0_58] : memref<1x4x16x8xbf16, #tpu.memory_space<vmem>>, vector<1x1x16x8xbf16>
      %63 = vector.shape_cast %62 : vector<1x1x16x8xbf16> to vector<16x8xbf16>
      %64 = vector.shape_cast %61 : vector<16x8xbf16> to vector<1x1x16x8xbf16>
      tpu.vector_store %arg9[%c0_55, %c0_56, %c0_57, %c0_58], %64 {strides = array<i32>} : memref<1x4x16x8xbf16, #tpu.memory_space<vmem>>, vector<1x1x16x8xbf16>,
      %c1_59 = arith.constant 1 : index
      %c0_60 = arith.constant 0 : index
      %c0_61 = arith.constant 0 : index
      %65 = vector.load %arg10[%c1_59, %c0_60, %c0_61] : memref<4x16x24xf32, #tpu.memory_space<vmem>>, vector<1x16x24xf32>
      %66 = vector.shape_cast %65 : vector<1x16x24xf32> to vector<16x24xf32>
      %c1_62 = arith.constant 1 : index
      %c0_63 = arith.constant 0 : index
      %c0_64 = arith.constant 0 : index
      %67 = vector.load %arg6[%c1_62, %c0_63, %c0_64] : memref<4x1x24xf32, #tpu.memory_space<vmem>>, vector<1x1x24xf32>
      %68 = vector.shape_cast %67 : vector<1x1x24xf32> to vector<1x24xf32>
      %69 = vector.broadcast %68 : vector<1x24xf32> to vector<16x24xf32>
      %70 = arith.addf %66, %69 : vector<16x24xf32>
      %71 = vector.extract_strided_slice %70 {offsets = [0, 0], sizes = [16, 8], strides = [1, 1]} : vector<16x24xf32> to vector<16x8xf32>
      %72 = arith.truncf %71 : vector<16x8xf32> to vector<16x8xbf16>
      %c0_65 = arith.constant 0 : index
      %c1_66 = arith.constant 1 : index
      %c0_67 = arith.constant 0 : index
      %c0_68 = arith.constant 0 : index
      %73 = vector.load %arg7[%c0_65, %c1_66, %c0_67, %c0_68] : memref<1x4x16x8xbf16, #tpu.memory_space<vmem>>, vector<1x1x16x8xbf16>
      %74 = vector.shape_cast %73 : vector<1x1x16x8xbf16> to vector<16x8xbf16>
      %75 = vector.shape_cast %72 : vector<16x8xbf16> to vector<1x1x16x8xbf16>
      tpu.vector_store %arg7[%c0_65, %c1_66, %c0_67, %c0_68], %75 {strides = array<i32>} : memref<1x4x16x8xbf16, #tpu.memory_space<vmem>>, vector<1x1x16x8xbf16>,
      %76 = vector.extract_strided_slice %70 {offsets = [0, 8], sizes = [16, 8], strides = [1, 1]} : vector<16x24xf32> to vector<16x8xf32>
      %77 = arith.truncf %76 : vector<16x8xf32> to vector<16x8xbf16>
      %c0_69 = arith.constant 0 : index
      %c1_70 = arith.constant 1 : index
      %c0_71 = arith.constant 0 : index
      %c0_72 = arith.constant 0 : index
      %78 = vector.load %arg8[%c0_69, %c1_70, %c0_71, %c0_72] : memref<1x4x16x8xbf16, #tpu.memory_space<vmem>>, vector<1x1x16x8xbf16>
      %79 = vector.shape_cast %78 : vector<1x1x16x8xbf16> to vector<16x8xbf16>
      %80 = vector.shape_cast %77 : vector<16x8xbf16> to vector<1x1x16x8xbf16>
      tpu.vector_store %arg8[%c0_69, %c1_70, %c0_71, %c0_72], %80 {strides = array<i32>} : memref<1x4x16x8xbf16, #tpu.memory_space<vmem>>, vector<1x1x16x8xbf16>,
      %81 = vector.extract_strided_slice %70 {offsets = [0, 16], sizes = [16, 8], strides = [1, 1]} : vector<16x24xf32> to vector<16x8xf32>
      %82 = arith.truncf %81 : vector<16x8xf32> to vector<16x8xbf16>
      %c0_73 = arith.constant 0 : index
      %c1_74 = arith.constant 1 : index
      %c0_75 = arith.constant 0 : index
      %c0_76 = arith.constant 0 : index
      %83 = vector.load %arg9[%c0_73, %c1_74, %c0_75, %c0_76] : memref<1x4x16x8xbf16, #tpu.memory_space<vmem>>, vector<1x1x16x8xbf16>
      %84 = vector.shape_cast %83 : vector<1x1x16x8xbf16> to vector<16x8xbf16>
      %85 = vector.shape_cast %82 : vector<16x8xbf16> to vector<1x1x16x8xbf16>
      tpu.vector_store %arg9[%c0_73, %c1_74, %c0_75, %c0_76], %85 {strides = array<i32>} : memref<1x4x16x8xbf16, #tpu.memory_space<vmem>>, vector<1x1x16x8xbf16>,
      %c2_77 = arith.constant 2 : index
      %c0_78 = arith.constant 0 : index
      %c0_79 = arith.constant 0 : index
      %86 = vector.load %arg10[%c2_77, %c0_78, %c0_79] : memref<4x16x24xf32, #tpu.memory_space<vmem>>, vector<1x16x24xf32>
      %87 = vector.shape_cast %86 : vector<1x16x24xf32> to vector<16x24xf32>
      %c2_80 = arith.constant 2 : index
      %c0_81 = arith.constant 0 : index
      %c0_82 = arith.constant 0 : index
      %88 = vector.load %arg6[%c2_80, %c0_81, %c0_82] : memref<4x1x24xf32, #tpu.memory_space<vmem>>, vector<1x1x24xf32>
      %89 = vector.shape_cast %88 : vector<1x1x24xf32> to vector<1x24xf32>
      %90 = vector.broadcast %89 : vector<1x24xf32> to vector<16x24xf32>
      %91 = arith.addf %87, %90 : vector<16x24xf32>
      %92 = vector.extract_strided_slice %91 {offsets = [0, 0], sizes = [16, 8], strides = [1, 1]} : vector<16x24xf32> to vector<16x8xf32>
      %93 = arith.truncf %92 : vector<16x8xf32> to vector<16x8xbf16>
      %c0_83 = arith.constant 0 : index
      %c2_84 = arith.constant 2 : index
      %c0_85 = arith.constant 0 : index
      %c0_86 = arith.constant 0 : index
      %94 = vector.load %arg7[%c0_83, %c2_84, %c0_85, %c0_86] : memref<1x4x16x8xbf16, #tpu.memory_space<vmem>>, vector<1x1x16x8xbf16>
      %95 = vector.shape_cast %94 : vector<1x1x16x8xbf16> to vector<16x8xbf16>
      %96 = vector.shape_cast %93 : vector<16x8xbf16> to vector<1x1x16x8xbf16>
      tpu.vector_store %arg7[%c0_83, %c2_84, %c0_85, %c0_86], %96 {strides = array<i32>} : memref<1x4x16x8xbf16, #tpu.memory_space<vmem>>, vector<1x1x16x8xbf16>,
      %97 = vector.extract_strided_slice %91 {offsets = [0, 8], sizes = [16, 8], strides = [1, 1]} : vector<16x24xf32> to vector<16x8xf32>
      %98 = arith.truncf %97 : vector<16x8xf32> to vector<16x8xbf16>
      %c0_87 = arith.constant 0 : index
      %c2_88 = arith.constant 2 : index
      %c0_89 = arith.constant 0 : index
      %c0_90 = arith.constant 0 : index
      %99 = vector.load %arg8[%c0_87, %c2_88, %c0_89, %c0_90] : memref<1x4x16x8xbf16, #tpu.memory_space<vmem>>, vector<1x1x16x8xbf16>
      %100 = vector.shape_cast %99 : vector<1x1x16x8xbf16> to vector<16x8xbf16>
      %101 = vector.shape_cast %98 : vector<16x8xbf16> to vector<1x1x16x8xbf16>
      tpu.vector_store %arg8[%c0_87, %c2_88, %c0_89, %c0_90], %101 {strides = array<i32>} : memref<1x4x16x8xbf16, #tpu.memory_space<vmem>>, vector<1x1x16x8xbf16>,
      %102 = vector.extract_strided_slice %91 {offsets = [0, 16], sizes = [16, 8], strides = [1, 1]} : vector<16x24xf32> to vector<16x8xf32>
      %103 = arith.truncf %102 : vector<16x8xf32> to vector<16x8xbf16>
      %c0_91 = arith.constant 0 : index
      %c2_92 = arith.constant 2 : index
      %c0_93 = arith.constant 0 : index
      %c0_94 = arith.constant 0 : index
      %104 = vector.load %arg9[%c0_91, %c2_92, %c0_93, %c0_94] : memref<1x4x16x8xbf16, #tpu.memory_space<vmem>>, vector<1x1x16x8xbf16>
      %105 = vector.shape_cast %104 : vector<1x1x16x8xbf16> to vector<16x8xbf16>
      %106 = vector.shape_cast %103 : vector<16x8xbf16> to vector<1x1x16x8xbf16>
      tpu.vector_store %arg9[%c0_91, %c2_92, %c0_93, %c0_94], %106 {strides = array<i32>} : memref<1x4x16x8xbf16, #tpu.memory_space<vmem>>, vector<1x1x16x8xbf16>,
      %c3_95 = arith.constant 3 : index
      %c0_96 = arith.constant 0 : index
      %c0_97 = arith.constant 0 : index
      %107 = vector.load %arg10[%c3_95, %c0_96, %c0_97] : memref<4x16x24xf32, #tpu.memory_space<vmem>>, vector<1x16x24xf32>
      %108 = vector.shape_cast %107 : vector<1x16x24xf32> to vector<16x24xf32>
      %c3_98 = arith.constant 3 : index
      %c0_99 = arith.constant 0 : index
      %c0_100 = arith.constant 0 : index
      %109 = vector.load %arg6[%c3_98, %c0_99, %c0_100] : memref<4x1x24xf32, #tpu.memory_space<vmem>>, vector<1x1x24xf32>
      %110 = vector.shape_cast %109 : vector<1x1x24xf32> to vector<1x24xf32>
      %111 = vector.broadcast %110 : vector<1x24xf32> to vector<16x24xf32>
      %112 = arith.addf %108, %111 : vector<16x24xf32>
      %113 = vector.extract_strided_slice %112 {offsets = [0, 0], sizes = [16, 8], strides = [1, 1]} : vector<16x24xf32> to vector<16x8xf32>
      %114 = arith.truncf %113 : vector<16x8xf32> to vector<16x8xbf16>
      %c0_101 = arith.constant 0 : index
      %c3_102 = arith.constant 3 : index
      %c0_103 = arith.constant 0 : index
      %c0_104 = arith.constant 0 : index
      %115 = vector.load %arg7[%c0_101, %c3_102, %c0_103, %c0_104] : memref<1x4x16x8xbf16, #tpu.memory_space<vmem>>, vector<1x1x16x8xbf16>
      %116 = vector.shape_cast %115 : vector<1x1x16x8xbf16> to vector<16x8xbf16>
      %117 = vector.shape_cast %114 : vector<16x8xbf16> to vector<1x1x16x8xbf16>
      tpu.vector_store %arg7[%c0_101, %c3_102, %c0_103, %c0_104], %117 {strides = array<i32>} : memref<1x4x16x8xbf16, #tpu.memory_space<vmem>>, vector<1x1x16x8xbf16>,
      %118 = vector.extract_strided_slice %112 {offsets = [0, 8], sizes = [16, 8], strides = [1, 1]} : vector<16x24xf32> to vector<16x8xf32>
      %119 = arith.truncf %118 : vector<16x8xf32> to vector<16x8xbf16>
      %c0_105 = arith.constant 0 : index
      %c3_106 = arith.constant 3 : index
      %c0_107 = arith.constant 0 : index
      %c0_108 = arith.constant 0 : index
      %120 = vector.load %arg8[%c0_105, %c3_106, %c0_107, %c0_108] : memref<1x4x16x8xbf16, #tpu.memory_space<vmem>>, vector<1x1x16x8xbf16>
      %121 = vector.shape_cast %120 : vector<1x1x16x8xbf16> to vector<16x8xbf16>
      %122 = vector.shape_cast %119 : vector<16x8xbf16> to vector<1x1x16x8xbf16>
      tpu.vector_store %arg8[%c0_105, %c3_106, %c0_107, %c0_108], %122 {strides = array<i32>} : memref<1x4x16x8xbf16, #tpu.memory_space<vmem>>, vector<1x1x16x8xbf16>,
      %123 = vector.extract_strided_slice %112 {offsets = [0, 16], sizes = [16, 8], strides = [1, 1]} : vector<16x24xf32> to vector<16x8xf32>
      %124 = arith.truncf %123 : vector<16x8xf32> to vector<16x8xbf16>
      %c0_109 = arith.constant 0 : index
      %c3_110 = arith.constant 3 : index
      %c0_111 = arith.constant 0 : index
      %c0_112 = arith.constant 0 : index
      %125 = vector.load %arg9[%c0_109, %c3_110, %c0_111, %c0_112] : memref<1x4x16x8xbf16, #tpu.memory_space<vmem>>, vector<1x1x16x8xbf16>
      %126 = vector.shape_cast %125 : vector<1x1x16x8xbf16> to vector<16x8xbf16>
      %127 = vector.shape_cast %124 : vector<16x8xbf16> to vector<1x1x16x8xbf16>
      tpu.vector_store %arg9[%c0_109, %c3_110, %c0_111, %c0_112], %127 {strides = array<i32>} : memref<1x4x16x8xbf16, #tpu.memory_space<vmem>>, vector<1x1x16x8xbf16>,
    } else {
    }
    return
  }
  func.func @transform_0(%arg0: i32, %arg1: i32, %arg2: i32, %arg3: i32) -> (i32, i32, i32) {
    %c0_i32 = arith.constant 0 : i32
    return %arg0, %arg1, %arg3 : i32, i32, i32
  }
  func.func @transform_1(%arg0: i32, %arg1: i32, %arg2: i32, %arg3: i32) -> (i32, i32, i32) {
    %c0_i32 = arith.constant 0 : i32
    %c0_i32_0 = arith.constant 0 : i32
    return %arg2, %arg3, %c0_i32 : i32, i32, i32
  }
  func.func @transform_2(%arg0: i32, %arg1: i32, %arg2: i32, %arg3: i32) -> (i32, i32, i32) {
    %c0_i32 = arith.constant 0 : i32
    %c0_i32_0 = arith.constant 0 : i32
    %c0_i32_1 = arith.constant 0 : i32
    return %arg2, %c0_i32, %c0_i32_0 : i32, i32, i32
  }
  func.func @transform_3(%arg0: i32, %arg1: i32, %arg2: i32, %arg3: i32) -> (i32, i32, i32, i32) {
    %c0_i32 = arith.constant 0 : i32
    %c0_i32_0 = arith.constant 0 : i32
    return %arg0, %arg2, %arg1, %c0_i32 : i32, i32, i32, i32
  }
  func.func @transform_4(%arg0: i32, %arg1: i32, %arg2: i32, %arg3: i32) -> (i32, i32, i32, i32) {
    %c0_i32 = arith.constant 0 : i32
    %c0_i32_0 = arith.constant 0 : i32
    return %arg0, %arg2, %arg1, %c0_i32 : i32, i32, i32, i32
  }
  func.func @transform_5(%arg0: i32, %arg1: i32, %arg2: i32, %arg3: i32) -> (i32, i32, i32, i32) {
    %c0_i32 = arith.constant 0 : i32
    %c0_i32_0 = arith.constant 0 : i32
    return %arg0, %arg2, %arg1, %c0_i32 : i32, i32, i32, i32
  }
}

module attributes {stable_mosaic.version = 11 : i64} {
  func.func @_out_proj_kernel(%arg0: i32, %arg1: i32, %arg2: i32, %arg3: i32, %arg4: memref<1x4x16x8xbf16, #tpu.memory_space<vmem>>, %arg5: memref<4x8x32xbf16, #tpu.memory_space<vmem>>, %arg6: memref<1x32xf32, #tpu.memory_space<vmem>>, %arg7: memref<1x16x32xf32, #tpu.memory_space<vmem>>, %arg8: memref<16x32xf32, #tpu.memory_space<vmem>>) attributes {dimension_semantics = [#tpu.dimension_semantics<parallel>, #tpu.dimension_semantics<parallel>, #tpu.dimension_semantics<parallel>, #tpu.dimension_semantics<arbitrary>], iteration_bounds = array<i64: 2, 1, 1, 1>, scalar_prefetch = 0 : i64, scratch_operands = 1 : i64, tpu.core_type = #tpu.core_type<tc>, window_params = [{transform_indices = @transform_0, window_bounds = array<i64: 1, 4, 16, 8>}, {transform_indices = @transform_1, window_bounds = array<i64: 4, 8, 32>}, {transform_indices = @transform_2, window_bounds = array<i64: 1, 32>}, {transform_indices = @transform_3, window_bounds = array<i64: 1, 16, 32>}]} {
    %c0_i32 = arith.constant 0 : i32
    %0 = arith.cmpi eq, %arg3, %c0_i32 : i32
    %1 = arith.extui %0 : i1 to i32
    %c0_i32_0 = arith.constant 0 : i32
    %2 = arith.cmpi ne, %1, %c0_i32_0 : i32
    scf.if %2 {
      %cst_34 = arith.constant 0.000000e+00 : f32
      %32 = vector.broadcast %cst_34 : f32 to vector<16x32xf32>
      %c0_35 = arith.constant 0 : index
      %c0_36 = arith.constant 0 : index
      %33 = vector.load %arg8[%c0_35, %c0_36] : memref<16x32xf32, #tpu.memory_space<vmem>>, vector<16x32xf32>
      tpu.vector_store %arg8[%c0_35, %c0_36], %32 {strides = array<i32>} : memref<16x32xf32, #tpu.memory_space<vmem>>, vector<16x32xf32>,
    } else {
    }
    %c0 = arith.constant 0 : index
    %c0_1 = arith.constant 0 : index
    %c0_2 = arith.constant 0 : index
    %c0_3 = arith.constant 0 : index
    %3 = vector.load %arg4[%c0, %c0_1, %c0_2, %c0_3] : memref<1x4x16x8xbf16, #tpu.memory_space<vmem>>, vector<1x1x16x8xbf16>
    %4 = vector.shape_cast %3 : vector<1x1x16x8xbf16> to vector<16x8xbf16>
    %c0_4 = arith.constant 0 : index
    %c0_5 = arith.constant 0 : index
    %c0_6 = arith.constant 0 : index
    %5 = vector.load %arg5[%c0_4, %c0_5, %c0_6] : memref<4x8x32xbf16, #tpu.memory_space<vmem>>, vector<1x8x32xbf16>
    %6 = vector.shape_cast %5 : vector<1x8x32xbf16> to vector<8x32xbf16>
    %cst = arith.constant dense<0.000000e+00> : vector<16x32xf32>
    %7 = tpu.matmul %4, %6, %cst {dimension_numbers = #tpu.dot_dimension_numbers<[1], [0], [0], [1], [0, 0, 1, 1], [], []>} : vector<16x8xbf16>, vector<8x32xbf16>, vector<16x32xf32> -> vector<16x32xf32>
    %c0_7 = arith.constant 0 : index
    %c1 = arith.constant 1 : index
    %c0_8 = arith.constant 0 : index
    %c0_9 = arith.constant 0 : index
    %8 = vector.load %arg4[%c0_7, %c1, %c0_8, %c0_9] : memref<1x4x16x8xbf16, #tpu.memory_space<vmem>>, vector<1x1x16x8xbf16>
    %9 = vector.shape_cast %8 : vector<1x1x16x8xbf16> to vector<16x8xbf16>
    %c1_10 = arith.constant 1 : index
    %c0_11 = arith.constant 0 : index
    %c0_12 = arith.constant 0 : index
    %10 = vector.load %arg5[%c1_10, %c0_11, %c0_12] : memref<4x8x32xbf16, #tpu.memory_space<vmem>>, vector<1x8x32xbf16>
    %11 = vector.shape_cast %10 : vector<1x8x32xbf16> to vector<8x32xbf16>
    %cst_13 = arith.constant dense<0.000000e+00> : vector<16x32xf32>
    %12 = tpu.matmul %9, %11, %cst_13 {dimension_numbers = #tpu.dot_dimension_numbers<[1], [0], [0], [1], [0, 0, 1, 1], [], []>} : vector<16x8xbf16>, vector<8x32xbf16>, vector<16x32xf32> -> vector<16x32xf32>
    %13 = arith.addf %7, %12 : vector<16x32xf32>
    %c0_14 = arith.constant 0 : index
    %c2 = arith.constant 2 : index
    %c0_15 = arith.constant 0 : index
    %c0_16 = arith.constant 0 : index
    %14 = vector.load %arg4[%c0_14, %c2, %c0_15, %c0_16] : memref<1x4x16x8xbf16, #tpu.memory_space<vmem>>, vector<1x1x16x8xbf16>
    %15 = vector.shape_cast %14 : vector<1x1x16x8xbf16> to vector<16x8xbf16>
    %c2_17 = arith.constant 2 : index
    %c0_18 = arith.constant 0 : index
    %c0_19 = arith.constant 0 : index
    %16 = vector.load %arg5[%c2_17, %c0_18, %c0_19] : memref<4x8x32xbf16, #tpu.memory_space<vmem>>, vector<1x8x32xbf16>
    %17 = vector.shape_cast %16 : vector<1x8x32xbf16> to vector<8x32xbf16>
    %cst_20 = arith.constant dense<0.000000e+00> : vector<16x32xf32>
    %18 = tpu.matmul %15, %17, %cst_20 {dimension_numbers = #tpu.dot_dimension_numbers<[1], [0], [0], [1], [0, 0, 1, 1], [], []>} : vector<16x8xbf16>, vector<8x32xbf16>, vector<16x32xf32> -> vector<16x32xf32>
    %19 = arith.addf %13, %18 : vector<16x32xf32>
    %c0_21 = arith.constant 0 : index
    %c3 = arith.constant 3 : index
    %c0_22 = arith.constant 0 : index
    %c0_23 = arith.constant 0 : index
    %20 = vector.load %arg4[%c0_21, %c3, %c0_22, %c0_23] : memref<1x4x16x8xbf16, #tpu.memory_space<vmem>>, vector<1x1x16x8xbf16>
    %21 = vector.shape_cast %20 : vector<1x1x16x8xbf16> to vector<16x8xbf16>
    %c3_24 = arith.constant 3 : index
    %c0_25 = arith.constant 0 : index
    %c0_26 = arith.constant 0 : index
    %22 = vector.load %arg5[%c3_24, %c0_25, %c0_26] : memref<4x8x32xbf16, #tpu.memory_space<vmem>>, vector<1x8x32xbf16>
    %23 = vector.shape_cast %22 : vector<1x8x32xbf16> to vector<8x32xbf16>
    %cst_27 = arith.constant dense<0.000000e+00> : vector<16x32xf32>
    %24 = tpu.matmul %21, %23, %cst_27 {dimension_numbers = #tpu.dot_dimension_numbers<[1], [0], [0], [1], [0, 0, 1, 1], [], []>} : vector<16x8xbf16>, vector<8x32xbf16>, vector<16x32xf32> -> vector<16x32xf32>
    %25 = arith.addf %19, %24 : vector<16x32xf32>
    %c0_28 = arith.constant 0 : index
    %c0_29 = arith.constant 0 : index
    %26 = vector.load %arg8[%c0_28, %c0_29] : memref<16x32xf32, #tpu.memory_space<vmem>>, vector<16x32xf32>
    %27 = arith.addf %26, %25 : vector<16x32xf32>
    %c0_30 = arith.constant 0 : index
    %c0_31 = arith.constant 0 : index
    %28 = vector.load %arg8[%c0_30, %c0_31] : memref<16x32xf32, #tpu.memory_space<vmem>>, vector<16x32xf32>
    tpu.vector_store %arg8[%c0_30, %c0_31], %27 {strides = array<i32>} : memref<16x32xf32, #tpu.memory_space<vmem>>, vector<16x32xf32>,
    %c0_i32_32 = arith.constant 0 : i32
    %29 = arith.cmpi eq, %arg3, %c0_i32_32 : i32
    %30 = arith.extui %29 : i1 to i32
    %c0_i32_33 = arith.constant 0 : i32
    %31 = arith.cmpi ne, %30, %c0_i32_33 : i32
    scf.if %31 {
      %c0_34 = arith.constant 0 : index
      %c0_35 = arith.constant 0 : index
      %32 = vector.load %arg8[%c0_34, %c0_35] : memref<16x32xf32, #tpu.memory_space<vmem>>, vector<16x32xf32>
      %c0_36 = arith.constant 0 : index
      %c0_37 = arith.constant 0 : index
      %33 = vector.load %arg6[%c0_36, %c0_37] : memref<1x32xf32, #tpu.memory_space<vmem>>, vector<1x32xf32>
      %34 = vector.broadcast %33 : vector<1x32xf32> to vector<16x32xf32>
      %35 = arith.addf %32, %34 : vector<16x32xf32>
      %c0_38 = arith.constant 0 : index
      %c0_39 = arith.constant 0 : index
      %c0_40 = arith.constant 0 : index
      %36 = vector.load %arg7[%c0_38, %c0_39, %c0_40] : memref<1x16x32xf32, #tpu.memory_space<vmem>>, vector<1x16x32xf32>
      %37 = vector.shape_cast %36 : vector<1x16x32xf32> to vector<16x32xf32>
      %38 = vector.shape_cast %35 : vector<16x32xf32> to vector<1x16x32xf32>
      tpu.vector_store %arg7[%c0_38, %c0_39, %c0_40], %38 {strides = array<i32>} : memref<1x16x32xf32, #tpu.memory_space<vmem>>, vector<1x16x32xf32>,
    } else {
    }
    return
  }
  func.func @transform_0(%arg0: i32, %arg1: i32, %arg2: i32, %arg3: i32) -> (i32, i32, i32, i32) {
    %c0_i32 = arith.constant 0 : i32
    %c0_i32_0 = arith.constant 0 : i32
    return %arg0, %arg3, %arg1, %c0_i32 : i32, i32, i32, i32
  }
  func.func @transform_1(%arg0: i32, %arg1: i32, %arg2: i32, %arg3: i32) -> (i32, i32, i32) {
    %c0_i32 = arith.constant 0 : i32
    %c0_i32_0 = arith.constant 0 : i32
    return %arg3, %c0_i32, %arg2 : i32, i32, i32
  }
  func.func @transform_2(%arg0: i32, %arg1: i32, %arg2: i32, %arg3: i32) -> (i32, i32) {
    %c0_i32 = arith.constant 0 : i32
    %c0_i32_0 = arith.constant 0 : i32
    return %c0_i32, %arg2 : i32, i32
  }
  func.func @transform_3(%arg0: i32, %arg1: i32, %arg2: i32, %arg3: i32) -> (i32, i32, i32) {
    %c0_i32 = arith.constant 0 : i32
    return %arg0, %arg1, %arg2 : i32, i32, i32
  }
}

module attributes {stable_mosaic.version = 11 : i64} {
  func.func @_flash_causal_kernel(%arg0: i32, %arg1: i32, %arg2: i32, %arg3: memref<1x1x16x8xbf16, #tpu.memory_space<vmem>>, %arg4: memref<1x1x16x8xbf16, #tpu.memory_space<vmem>>, %arg5: memref<1x1x16x8xbf16, #tpu.memory_space<vmem>>, %arg6: memref<1x1x16x8xbf16, #tpu.memory_space<vmem>>) attributes {dimension_semantics = [#tpu.dimension_semantics<parallel>, #tpu.dimension_semantics<parallel>, #tpu.dimension_semantics<parallel>], iteration_bounds = array<i64: 2, 4, 1>, scalar_prefetch = 0 : i64, scratch_operands = 0 : i64, tpu.core_type = #tpu.core_type<tc>, window_params = [{transform_indices = @transform_0, window_bounds = array<i64: 1, 1, 16, 8>}, {transform_indices = @transform_1, window_bounds = array<i64: 1, 1, 16, 8>}, {transform_indices = @transform_2, window_bounds = array<i64: 1, 1, 16, 8>}, {transform_indices = @transform_3, window_bounds = array<i64: 1, 1, 16, 8>}]} {
    %c1_i32 = arith.constant 1 : i32
    %0 = arith.muli %arg2, %c1_i32 : i32
    %c16_i32 = arith.constant 16 : i32
    %1 = arith.muli %arg2, %c16_i32 : i32
    %c0 = arith.constant 0 : index
    %c0_0 = arith.constant 0 : index
    %c0_1 = arith.constant 0 : index
    %c0_2 = arith.constant 0 : index
    %2 = vector.load %arg3[%c0, %c0_0, %c0_1, %c0_2] : memref<1x1x16x8xbf16, #tpu.memory_space<vmem>>, vector<1x1x16x8xbf16>
    %3 = vector.shape_cast %2 : vector<1x1x16x8xbf16> to vector<16x8xbf16>
    %cst = arith.constant -1.000000e+30 : f32
    %4 = vector.broadcast %cst : f32 to vector<16x1xf32>
    %cst_3 = arith.constant 0.000000e+00 : f32
    %5 = vector.broadcast %cst_3 : f32 to vector<16x1xf32>
    %cst_4 = arith.constant 0.000000e+00 : f32
    %6 = vector.broadcast %cst_4 : f32 to vector<16x8xf32>
    %c0_i32 = arith.constant 0 : i32
    %7 = arith.subi %0, %c0_i32 : i32
    %8 = arith.addi %c0_i32, %7 : i32
    %c1_i32_5 = arith.constant 1 : i32
    %9:3 = scf.for %arg7 = %c0_i32 to %8 step %c1_i32_5 iter_args(%arg8 = %4, %arg9 = %5, %arg10 = %6) -> (vector<16x1xf32>, vector<16x1xf32>, vector<16x8xf32>)  : i32 {
      %c16_i32_24 = arith.constant 16 : i32
      %59 = arith.muli %arg7, %c16_i32_24 : i32
      %60 = tpu.assume_multiple %59, 16 : i32
      %c0_25 = arith.constant 0 : index
      %c0_26 = arith.constant 0 : index
      %61 = arith.index_cast %60 : i32 to index
      %c0_27 = arith.constant 0 : index
      %62 = vector.load %arg4[%c0_25, %c0_26, %61, %c0_27] : memref<1x1x16x8xbf16, #tpu.memory_space<vmem>>, vector<1x1x16x8xbf16>
      %63 = vector.shape_cast %62 : vector<1x1x16x8xbf16> to vector<16x8xbf16>
      %c0_28 = arith.constant 0 : index
      %c0_29 = arith.constant 0 : index
      %64 = arith.index_cast %60 : i32 to index
      %c0_30 = arith.constant 0 : index
      %65 = vector.load %arg5[%c0_28, %c0_29, %64, %c0_30] : memref<1x1x16x8xbf16, #tpu.memory_space<vmem>>, vector<1x1x16x8xbf16>
      %66 = vector.shape_cast %65 : vector<1x1x16x8xbf16> to vector<16x8xbf16>
      %cst_31 = arith.constant dense<0.000000e+00> : vector<16x16xf32>
      %67 = tpu.matmul %3, %63, %cst_31 {dimension_numbers = #tpu.dot_dimension_numbers<[1], [1], [0], [0], [0, 0, 1, 0], [], []>} : vector<16x8xbf16>, vector<16x8xbf16>, vector<16x16xf32> -> vector<16x16xf32>
      %cst_32 = arith.constant dense<0xFF800000> : vector<16xf32>
      %68 = vector.multi_reduction <maximumf>, %67, %cst_32 [1] : vector<16x16xf32> to vector<16xf32>
      %69 = vector.shape_cast %68 : vector<16xf32> to vector<16x1xf32>
      %70 = arith.maximumf %arg8, %69 : vector<16x1xf32>
      %71 = arith.subf %arg8, %70 : vector<16x1xf32>
      %72 = math.exp %71 : vector<16x1xf32>
      %73 = vector.broadcast %70 : vector<16x1xf32> to vector<16x16xf32>
      %74 = arith.subf %67, %73 : vector<16x16xf32>
      %75 = math.exp %74 : vector<16x16xf32>
      %76 = arith.mulf %72, %arg9 : vector<16x1xf32>
      %cst_33 = arith.constant dense<0.000000e+00> : vector<16xf32>
      %77 = vector.multi_reduction <add>, %75, %cst_33 [1] : vector<16x16xf32> to vector<16xf32>
      %78 = vector.shape_cast %77 : vector<16xf32> to vector<16x1xf32>
      %79 = arith.addf %76, %78 : vector<16x1xf32>
      %80 = vector.broadcast %72 : vector<16x1xf32> to vector<16x8xf32>
      %81 = arith.mulf %80, %arg10 : vector<16x8xf32>
      %82 = arith.truncf %75 : vector<16x16xf32> to vector<16x16xbf16>
      %cst_34 = arith.constant dense<0.000000e+00> : vector<16x8xf32>
      %83 = tpu.matmul %82, %66, %cst_34 {dimension_numbers = #tpu.dot_dimension_numbers<[1], [0], [0], [1], [0, 0, 1, 1], [], []>} : vector<16x16xbf16>, vector<16x8xbf16>, vector<16x8xf32> -> vector<16x8xf32>
      %84 = arith.addf %81, %83 : vector<16x8xf32>
      scf.yield %70, %79, %84 : vector<16x1xf32>, vector<16x1xf32>, vector<16x8xf32>
    }
    %c0_i32_6 = arith.constant 0 : i32
    %10 = arith.addi %0, %c0_i32_6 : i32
    %c16_i32_7 = arith.constant 16 : i32
    %11 = arith.muli %10, %c16_i32_7 : i32
    %12 = tpu.assume_multiple %11, 16 : i32
    %c0_8 = arith.constant 0 : index
    %c0_9 = arith.constant 0 : index
    %13 = arith.index_cast %12 : i32 to index
    %c0_10 = arith.constant 0 : index
    %14 = vector.load %arg4[%c0_8, %c0_9, %13, %c0_10] : memref<1x1x16x8xbf16, #tpu.memory_space<vmem>>, vector<1x1x16x8xbf16>
    %15 = vector.shape_cast %14 : vector<1x1x16x8xbf16> to vector<16x8xbf16>
    %c0_11 = arith.constant 0 : index
    %c0_12 = arith.constant 0 : index
    %16 = arith.index_cast %12 : i32 to index
    %c0_13 = arith.constant 0 : index
    %17 = vector.load %arg5[%c0_11, %c0_12, %16, %c0_13] : memref<1x1x16x8xbf16, #tpu.memory_space<vmem>>, vector<1x1x16x8xbf16>
    %18 = vector.shape_cast %17 : vector<1x1x16x8xbf16> to vector<16x8xbf16>
    %cst_14 = arith.constant dense<0.000000e+00> : vector<16x16xf32>
    %19 = tpu.matmul %3, %15, %cst_14 {dimension_numbers = #tpu.dot_dimension_numbers<[1], [1], [0], [0], [0, 0, 1, 0], [], []>} : vector<16x8xbf16>, vector<16x8xbf16>, vector<16x16xf32> -> vector<16x16xf32>
    %20 = tpu.iota {dimensions = array<i32: 0>} : vector<16x1xi32>
    %21 = vector.broadcast %1 : i32 to vector<16x1xi32>
    %22 = arith.addi %21, %20 : vector<16x1xi32>
    %23 = tpu.iota {dimensions = array<i32: 1>} : vector<1x16xi32>
    %24 = vector.broadcast %12 : i32 to vector<1x16xi32>
    %25 = arith.addi %24, %23 : vector<1x16xi32>
    %26 = vector.broadcast %22 : vector<16x1xi32> to vector<16x16xi32>
    %27 = vector.broadcast %25 : vector<1x16xi32> to vector<16x16xi32>
    %28 = arith.cmpi sge, %26, %27 : vector<16x16xi32>
    %cst_15 = arith.constant -1.000000e+30 : f32
    %29 = vector.broadcast %cst_15 : f32 to vector<16x16xf32>
    %30 = arith.select %28, %19, %29 : vector<16x16xi1>, vector<16x16xf32>
    %cst_16 = arith.constant dense<0xFF800000> : vector<16xf32>
    %31 = vector.multi_reduction <maximumf>, %30, %cst_16 [1] : vector<16x16xf32> to vector<16xf32>
    %32 = vector.shape_cast %31 : vector<16xf32> to vector<16x1xf32>
    %33 = arith.maximumf %9#0, %32 : vector<16x1xf32>
    %34 = arith.subf %9#0, %33 : vector<16x1xf32>
    %35 = math.exp %34 : vector<16x1xf32>
    %36 = vector.broadcast %33 : vector<16x1xf32> to vector<16x16xf32>
    %37 = arith.subf %30, %36 : vector<16x16xf32>
    %38 = math.exp %37 : vector<16x16xf32>
    %39 = arith.mulf %35, %9#1 : vector<16x1xf32>
    %cst_17 = arith.constant dense<0.000000e+00> : vector<16xf32>
    %40 = vector.multi_reduction <add>, %38, %cst_17 [1] : vector<16x16xf32> to vector<16xf32>
    %41 = vector.shape_cast %40 : vector<16xf32> to vector<16x1xf32>
    %42 = arith.addf %39, %41 : vector<16x1xf32>
    %43 = vector.broadcast %35 : vector<16x1xf32> to vector<16x8xf32>
    %44 = arith.mulf %43, %9#2 : vector<16x8xf32>
    %45 = arith.truncf %38 : vector<16x16xf32> to vector<16x16xbf16>
    %cst_18 = arith.constant dense<0.000000e+00> : vector<16x8xf32>
    %46 = tpu.matmul %45, %18, %cst_18 {dimension_numbers = #tpu.dot_dimension_numbers<[1], [0], [0], [1], [0, 0, 1, 1], [], []>} : vector<16x16xbf16>, vector<16x8xbf16>, vector<16x8xf32> -> vector<16x8xf32>
    %47 = arith.addf %44, %46 : vector<16x8xf32>
    %48 = tpu.reciprocal %42 {approx = true} : vector<16x1xf32> -> vector<16x1xf32>
    %49 = arith.mulf %42, %48 : vector<16x1xf32>
    %cst_19 = arith.constant 2.000000e+00 : f32
    %50 = vector.broadcast %cst_19 : f32 to vector<16x1xf32>
    %51 = arith.subf %50, %49 : vector<16x1xf32>
    %52 = arith.mulf %48, %51 : vector<16x1xf32>
    %53 = vector.broadcast %52 : vector<16x1xf32> to vector<16x8xf32>
    %54 = arith.mulf %47, %53 : vector<16x8xf32>
    %55 = arith.truncf %54 : vector<16x8xf32> to vector<16x8xbf16>
    %c0_20 = arith.constant 0 : index
    %c0_21 = arith.constant 0 : index
    %c0_22 = arith.constant 0 : index
    %c0_23 = arith.constant 0 : index
    %56 = vector.load %arg6[%c0_20, %c0_21, %c0_22, %c0_23] : memref<1x1x16x8xbf16, #tpu.memory_space<vmem>>, vector<1x1x16x8xbf16>
    %57 = vector.shape_cast %56 : vector<1x1x16x8xbf16> to vector<16x8xbf16>
    %58 = vector.shape_cast %55 : vector<16x8xbf16> to vector<1x1x16x8xbf16>
    tpu.vector_store %arg6[%c0_20, %c0_21, %c0_22, %c0_23], %58 {strides = array<i32>} : memref<1x1x16x8xbf16, #tpu.memory_space<vmem>>, vector<1x1x16x8xbf16>,
    return
  }
  func.func @transform_0(%arg0: i32, %arg1: i32, %arg2: i32) -> (i32, i32, i32, i32) {
    %c0_i32 = arith.constant 0 : i32
    %c0_i32_0 = arith.constant 0 : i32
    return %arg0, %arg1, %arg2, %c0_i32 : i32, i32, i32, i32
  }
  func.func @transform_1(%arg0: i32, %arg1: i32, %arg2: i32) -> (i32, i32, i32, i32) {
    %c0_i32 = arith.constant 0 : i32
    %c0_i32_0 = arith.constant 0 : i32
    %c0_i32_1 = arith.constant 0 : i32
    return %arg0, %arg1, %c0_i32, %c0_i32_0 : i32, i32, i32, i32
  }
  func.func @transform_2(%arg0: i32, %arg1: i32, %arg2: i32) -> (i32, i32, i32, i32) {
    %c0_i32 = arith.constant 0 : i32
    %c0_i32_0 = arith.constant 0 : i32
    %c0_i32_1 = arith.constant 0 : i32
    return %arg0, %arg1, %c0_i32, %c0_i32_0 : i32, i32, i32, i32
  }
  func.func @transform_3(%arg0: i32, %arg1: i32, %arg2: i32) -> (i32, i32, i32, i32) {
    %c0_i32 = arith.constant 0 : i32
    %c0_i32_0 = arith.constant 0 : i32
    return %arg0, %arg1, %arg2, %c0_i32 : i32, i32, i32, i32
  }
}

</mosaic_0001>

<bundles_post_ra>
// kernel: _forward.5
= control target key start
LH: loop header
LB: loop body
LE: loop exit
PB: predicated region body
PF: predicated region fallthrough
CT: control target
= control target key end

     0   :  { %8 = vsyncpa [#allocation4], 0  ;;  %s1060_s0 = inlined_call_operand.vmem [shape: bf16[2,4,16,8], index: 0, kind: input, shape index: {}]   ;;  %s1061_s1 = inlined_call_operand.vmem [shape: bf16[4,8,32], index: 1, kind: input, shape index: {}]   ;;  %s1062_s2 = inlined_call_operand.vmem [shape: f32[1,32], index: 2, kind: input, shape index: {}]   ;;  %s1063_s3 = inlined_call_operand.hbm [shape: f32[2,16,32], index: 3, kind: output, shape index: {}]  }
   0x1   :  { %10 = vsyncpa [#allocation4 + $0x1], 0  ;;  %s917_s12 = smov 0   ;;  %s919_s13 = smov 0  }
   0x2   :  { %s921_s14 = smov 0   ;;  %s923_s15 = smov 0  }
   0x3   :  { %s925_s16 = smov 0   ;;  %s927_s17 = smov 0  }
   0x4 LB: > { %s684_s18 = sadd.s32 4294967295, %s890_s17   ;;  %s685_s19 = sadd.s32 4294967294, %s890_s17   ;;  %s890_s17 = sphi %s927_s17, %s16_s17   ;;  %s886_s16 = sphi %s925_s16, %s1070_s16   ;;  %s882_s15 = sphi %s923_s15, %s1069_s15   ;;  %s878_s14 = sphi %s921_s14, %s1068_s14   ;;  %s874_s13 = sphi %s919_s13, %s1067_s13   ;;  %s870_s12 = sphi %s917_s12, %s1066_s12  }
   0x5   : > { %s42_s20 = sadd.s32 1, %s886_s16  ;;  %s137_s21 = sadd.s32 1, %s878_s14 }
   0x6   : > { %p44_p0 = scmp.ge.s32.totalorder %s42_s20, 2  ;;  %p147_p1 = scmp.ne.s32.totalorder %s878_s14, %s874_s13 }
   0x7   : > { %p148_p2 = scmp.eq.s32.totalorder %s684_s18, 1  ;;  %p153_p3 = scmp.ne.s32.totalorder %s874_s13, %s870_s12 }
   0x8   : > { %s1072_s20 = smov (%p44_p0, %s42_s20), 0  ;;  %p154_p5 = scmp.eq.s32.totalorder %s685_s19, 1 }
   0x9   : > { %p957_p4 = por %p148_p2, %p147_p1  ;;  %s130_s23 = ssub.s32 %s886_s16, %s1072_s20 }
   0xa   : > { %p690_p6 = scmp.ge.s32.totalorder %s890_s17, 1  ;;  %p135_p7 = scmp.eq.s32.totalorder %s130_s23, 0 }
   0xb   : > { %p964_p8 = por %p154_p5, %p153_p3  ;;  %p209_p9 = scmp.lt.s32.totalorder %s890_s17, 3 }
   0xc   : > { %s970_s25 = scalar_select %p135_p7, %s878_s14, %s137_s21  }
   0xd   : > { %p210_p10 = pnand %p690_p6, %p209_p9 }
   0xe   : > { %p255_p11 = scmp.lt.s32.totalorder (!%p210_p10), %s882_s15, 1  ;;  %s250_s18 = sand.u32 (!%p210_p10), 1, %s874_s13  }
   0xf   : > { %213 = sbr.rel (%p210_p10) target bundleno = 261 (0x105), region = 32  ;;  %s691_s19 = sshll.u32 (!%p210_p10), %s250_s18, 4 }
  0x10   : > { %s718_s26 = sshll.u32 (!%p210_p10), %s882_s15, 8  ;;  %s252_s27 = scalar_lea.vmem (!%p210_p10), [#allocation3], %s691_s19 }
  0x11   : > { %s562_s28 = sshll.u32 (!%p210_p10), %s252_s27, 4  ;;  %s1010_s4 = scalar_lea.hbm (!%p210_p10), %s1063_s3, %s718_s26  ;;  %s1012_s28 = int_to_ptr.vmem [resolvable:$true] %s562_s28 }
  0x12   : > { %s1015_s5 = scalar_lea.sflag (!%p210_p10), [#allocation4], %s250_s18 }
  0x14   : > { %v696_v0 = vld [vmem:[%s1061_s1 + $0x4] sm:$0xf]  ;;  %vm307_vm0 = vcmask 1043456   ;;  %v292_v1 = vld [vmem:[%s1061_s1] sm:$0xf]  ;;  %v892_v2 = vmov 0.0  }
  0x15   : > { %727 = vmatprep.subr.bf16.mxu0 %v892_v2  ;;  %v309_v3 = vsel %vm307_vm0, %v696_v0, 0  ;;  %733 = vmatprep.subr.bf16.mxu1 %v892_v2  ;;  %v361_v4 = vsel %vm307_vm0, %v292_v1, 0  ;;  %vm893_vm1 = vmmov 0   ;;  %s256_s30 = scalar_select %p255_p11, %s882_s15, 1  ;;  %v703_v5 = vld [vmem:[%s1061_s1 + $0x8] sm:$0xf] }
  0x16   : > { %728 = vmatpush3.bf16.msra.mxu0 %v309_v3  ;;  %734 = vmatpush3.bf16.msra.mxu1 %v361_v4  ;;  %v708_v6 = vld [vmem:[%s1061_s1 + $0xc] sm:$0xf]  ;;  %vm303_vm2 = vcmask 64512   ;;  %v418_v8 = vsel %vm307_vm0, %v703_v5, 0  ;;  %vm287_vm3 = vcmask 261120   ;;  %s814_s15 = scalar_lea.vmem %s1012_s28, 256 }
  0x17   : > { %729 = vmatprep.mubr.msk.bf16.mxu0 %vm893_vm1, %v892_v2  ;;  %735 = vmatprep.mubr.msk.bf16.mxu1 %vm893_vm1, %v892_v2  ;;  %s717_s6 = sshll.u32 %s256_s30, 5  ;;  %v477_v10 = vsel %vm307_vm0, %v708_v6, 0  ;;  %288 = vst.msk [vmem:[#allocation2] sm:$0xff] %vm287_vm3, %v892_v2  ;;  %289 = vst.msk [vmem:[#allocation2 + $0x8] sm:$0xff] %vm287_vm3, %v892_v2  ;;  %v711_v39 = vld [vmem:[%s1062_s2] ss:$0 sm:$0xff]  ;;  %p815_p12 = scmp.ne.s32.totalorder %s1012_s28, %s814_s15 }
  0x18   : > { %739 = vmatprep.subr.bf16.mxu0 %v892_v2  ;;  %745 = vmatprep.subr.bf16.mxu1 %v892_v2  ;;  %s266_s11 = scalar_lea.vmem %s1060_s0, %s717_s6  ;;  %s894_s6 = smov [#allocation3]  }
  0x19   : > { %v810_v7 = vld [vmem:[%s266_s11 + $0x8] sm:$0xff]   ;;  %v811_v9 = vld [vmem:[%s266_s11] sm:$0xff]   ;;  %v812_v11 = vld [vmem:[%s266_s11 + $0x10] sm:$0xff]   ;;  %p816_p13 = pnand %p815_p12, %p957_p4  ;;  %s818_s7 = sshll.u32 %s894_s6, 4  ;;  %s819_s7 = int_to_ptr.vmem [resolvable:$false] %s818_s7 }
  0x1a   : > { %730 = vmatmul.mubr.msk.bf16.vlgmr.msra.gmra.mxu0 %vm303_vm2, %v810_v7  ;;  %736 = vmatmul.mubr.msk.bf16.vlgmr.msra.gmra.mxu1 %vm303_vm2, %v811_v9  ;;  %v813_v12 = vld [vmem:[%s266_s11 + $0x18] sm:$0xff]   ;;  %s820_s8 = scalar_lea.vmem %s819_s7, 512  ;;  %p821_p1 = scmp.lt.s32.totalorder %s1012_s28, %s819_s7 }
  0x1b   : > { %740 = vmatpush3.bf16.msra.mxu0 %v418_v8  ;;  %746 = vmatpush3.bf16.msra.mxu1 %v477_v10  ;;  %p817_p0 = pneg %p816_p13  ;;  %p822_p2 = scmp.lt.s32.totalorder %s820_s8, %s814_s15 }
  0x1c   : > { %741 = vmatprep.mubr.msk.bf16.mxu0 %vm893_vm1, %v892_v2  ;;  %747 = vmatprep.mubr.msk.bf16.mxu1 %vm893_vm1, %v892_v2 }
  0x1d   : > { %p823_p3 = por %p822_p2, %p821_p1 }
  0x1e   : > { %v522_v25 = vld [vmem:[#allocation2] sm:$0xff]  ;;  %v523_v34 = vld [vmem:[#allocation2 + $0x8] sm:$0xff] }
  0x1f   : > { %p824_p5 = pnand %p823_p3, %p817_p0 }
  0x22   : > { %742 = vmatmul.mubr.msk.bf16.vlgmr.msra.gmra.mxu0 %vm303_vm2, %v812_v11  ;;  %748 = vmatmul.mubr.msk.bf16.vlgmr.msra.gmra.mxu1 %vm303_vm2, %v813_v12 }
  0xda   : > { %v345_v13 = vpop.f32.mrf.mxu0  ;;  %v397_v14 = vpop.f32.mrf.mxu1 }
  0xdb   : > { %v398_v20 = vadd.f32 %v397_v14, %v345_v13 }
  0xdc   : > { %v731_v15 = vpop.f32.mrf.mxu0  ;;  %v737_v16 = vpop.f32.mrf.mxu1 }
  0xde   : > { %v348_v17 = vpop.f32.mrf.mxu0  ;;  %v400_v18 = vpop.f32.mrf.mxu1 }
  0xdf   : > { %v401_v27 = vadd.f32 %v400_v18, %v348_v17 }
  0xe0   : > { %v732_v19 = vpop.f32.mrf.mxu0  ;;  %v738_v21 = vpop.f32.mrf.mxu1 }
  0xe2   : > { %v454_v22 = vpop.f32.mrf.mxu0  ;;  %v513_v24 = vpop.f32.mrf.mxu1 }
  0xe3   : > { %v461_v23 = vadd.f32 %v454_v22, %v398_v20 }
  0xe4   : > { %v743_v26 = vpop.f32.mrf.mxu0  ;;  %v749_v29 = vpop.f32.mrf.mxu1 }
  0xe5   : > { %v520_v28 = vadd.f32 %v513_v24, %v461_v23 }
  0xe6   : > { %v457_v30 = vpop.f32.mrf.mxu0  ;;  %v516_v33 = vpop.f32.mrf.mxu1 }
  0xe7   : > { %v524_v31 = vadd.f32 %v522_v25, %v520_v28  ;;  %v462_v32 = vadd.f32 %v457_v30, %v401_v27 }
  0xe8   : > { %v744_v35 = vpop.f32.mrf.mxu0  ;;  %v750_v37 = vpop.f32.mrf.mxu1 }
  0xe9   : > { %527 = vst.msk [vmem:[#allocation2] sm:$0xff] %vm287_vm3, %v524_v31  ;;  %v521_v36 = vadd.f32 %v516_v33, %v462_v32 }
  0xeb   : > { %v525_v38 = vadd.f32 %v523_v34, %v521_v36 }
  0xed   : > { %528 = vst.msk [vmem:[#allocation2 + $0x8] sm:$0xff] %vm287_vm3, %v525_v38 }
  0xf0   : > { %v532_v40 = vld [vmem:[#allocation2] sm:$0xff] }
  0xf1   : > { %v541_v41 = vadd.f32 %v711_v39, %v532_v40 }
  0xf3   : > { %543 = vst.msk [vmem:[%s252_s27] sm:$0xff] %vm287_vm3, %v541_v41 }
  0xf4   : > { %v533_v42 = vld [vmem:[#allocation2 + $0x8] sm:$0xff] }
  0xf5   : > { %v542_v43 = vadd.f32 %v711_v39, %v533_v42 }
  0xf7   : > { %544 = vst.msk [vmem:[%s252_s27 + $0x8] sm:$0xff] %vm287_vm3, %v542_v43 }
  0xf8   : > { %827 = shalt.err (!%p824_p5)
}
  0xf9   : > { %s828_s9 = scalar_lea.hbm %s1010_s4, 256  ;;  %s832_s18 = scalar_lea.hbm %s1063_s3, 512 }
  0xfa   : > { %p829_p6 = scmp.ne.s32.totalorder %s1010_s4, %s828_s9  ;;  %p833_p10 = scmp.lt.s32.totalorder %s1010_s4, %s1063_s3 }
  0xfb   : > { %p834_p11 = scmp.lt.s32.totalorder %s832_s18, %s828_s9 }
  0xfc   : > { %p830_p7 = pnand %p829_p6, %p957_p4 }
  0xfd   : > { %p835_p12 = por %p834_p11, %p833_p10 }
  0xfe   : > { %p831_p9 = pneg %p830_p7 }
 0x100   : > { %p836_p13 = pnand %p835_p12, %p831_p9 }
 0x102   : > { %839 = shalt.err (!%p836_p13)
}
 0x103   : > { %s895_s23 = smov 128   ;;  %s896_s26 = smov 8  }
 0x104   : > { %751 = dma.vmem_to_hbm [thread:$0]  (%p957_p4), %s1012_s28, 256, %s1010_s4, %s1015_s5, %s895_s23, %s895_s23, %s896_s26  }
 0x105 PF: > { %p757_p0 = scmp.ge.s32.totalorder %s890_s17, 2  ;;  %s577_s27 = sand.u32 1, %s870_s12  }
 0x106   : > { %s578_s29 = scalar_lea.sflag [#allocation4], %s577_s27 }
 0x107   : > { %p754_p1 = pnand %p757_p0, %p964_p8 }
 0x109   : > { %p755_p2 = pneg %p754_p1 }
 0x10b   : > { %865 = dma.done.wait (%p755_p2), %s578_s29, 256  }
 0x10c   : > { %867 = vsyncadd (%p755_p2), %s578_s29, 4294967040  ;;  %s16_s17 = sadd.s32 1, %s890_s17   ;;  %s1066_s12 = smov %s874_s13 }
 0x10d   : > { %p13_p3 = scmp.ge.s32.totalorder %s16_s17, 4   ;;  %s1067_s13 = smov %s878_s14 }
 0x10e   : > { %s1068_s14 = smov %s970_s25  ;;  %s1069_s15 = smov %s886_s16 }
 0x10f   : > { %s1070_s16 = smov %s1072_s20  ;;  %15 = sbr.rel (!%p13_p3) target bundleno = 4 (0x4), region = 87 }
 0x114   :  { %583 = vsyncpa [#allocation4], 1 }
 0x115   :  { %585 = vsyncpa [#allocation4 + $0x1], 1 }

// kernel: _forward.3
= control target key start
LH: loop header
LB: loop body
LE: loop exit
PB: predicated region body
PF: predicated region fallthrough
CT: control target
= control target key end

     0   :  { %s1395_s18 = smov 0   ;;  %s1397_s19 = smov 0   ;;  %s1563_s0 = inlined_call_operand.vmem [shape: bf16[2,16,32], index: 0, kind: input, shape index: {}]   ;;  %s1564_s1 = inlined_call_operand.vmem [shape: bf16[4,32,24], index: 1, kind: input, shape index: {}]   ;;  %s1565_s2 = inlined_call_operand.vmem [shape: f32[4,1,24], index: 2, kind: input, shape index: {}]   ;;  %s1566_s3 = inlined_call_operand.vmem [shape: bf16[2,4,16,8], index: 3, kind: output, shape index: {0}]   ;;  %s1567_s4 = inlined_call_operand.vmem [shape: bf16[2,4,16,8], index: 4, kind: output, shape index: {1}]   ;;  %s1568_s5 = inlined_call_operand.vmem [shape: bf16[2,4,16,8], index: 5, kind: output, shape index: {2}]  }
   0x1   :  { %s1399_s20 = smov 0  }
   0x2 LB: > { %s42_s21 = sadd.s32 1, %s1355_s19  ;;  %p1175_p0 = scmp.ge.s32.totalorder %s1359_s20, 1  ;;  %s1359_s20 = sphi %s1399_s20, %s16_s20   ;;  %s1355_s19 = sphi %s1397_s19, %s1570_s19   ;;  %s1351_s18 = sphi %s1395_s18, %s1569_s18  }
   0x3   : > { %p44_p1 = scmp.ge.s32.totalorder %s42_s21, 2  ;;  %p271_p2 = scmp.lt.s32.totalorder %s1359_s20, 3 }
   0x5   : > { %s1572_s21 = smov (%p44_p1, %s42_s21), 0  ;;  %p272_p3 = pnand %p1175_p0, %p271_p2 }
   0x6   : > { %p358_p4 = scmp.lt.s32.totalorder (!%p272_p3), %s1351_s18, 1  ;;  %s1363_s28 = smov (!%p272_p3), 112  }
   0x7   : > { %275 = sbr.rel (%p272_p3) target bundleno = 372 (0x174), region = 32  ;;  %s1364_s29 = smov (!%p272_p3), 120  }
   0xc   : > { %v1328_v0 = vld [vmem:[%s1564_s1 + $0x8] sm:$0xff]   ;;  %v1361_v1 = vmov 0.0   ;;  %v1329_v2 = vld [vmem:[%s1564_s1 + $0x18] sm:$0xff]   ;;  %v1330_v3 = vld [vmem:[%s1564_s1] sm:$0xff]   ;;  %vm1362_vm0 = vmmov 0   ;;  %s1574_s18 = smov (!%p358_p4, %s1351_s18), 1 }
   0xd   : > { %1268 = vmatprep.subr.bf16.mxu0 %v1361_v1  ;;  %1276 = vmatprep.subr.bf16.mxu1 %v1361_v1  ;;  %v1331_v4 = vld [vmem:[%s1564_s1 + $0x10] sm:$0xff]   ;;  %vm440_vm1 = vcmask 195584   ;;  %s1244_s30 = sshll.u32 %s1574_s18, 3  ;;  %v1333_v5 = vld [vmem:[%s1564_s1 + $0x28] sm:$0xff]   ;;  %vm474_vm2 = vcmask 261120   ;;  %v1335_v6 = vld [vmem:[%s1564_s1 + $0x38] sm:$0xff]  }
   0xe   : > { %1269 = vmatpush3.bf16.msra.mxu0 %v1328_v0  ;;  %1272 = vmatprep.mubr.msk.bf16.mxu0 %vm1362_vm0, %v1361_v1  ;;  %441 = vst.msk [vmem:[#allocation2] sm:$0xff] %vm440_vm1, %v1361_v1  ;;  %442 = vst.msk [vmem:[#allocation2 + $0x8] sm:$0xff] %vm440_vm1, %v1361_v1  ;;  %s368_s10 = scalar_lea.vmem %s1563_s0, %s1244_s30  ;;  %v1334_v8 = vld [vmem:[%s1564_s1 + $0x20] sm:$0xff]   ;;  %v1336_v9 = vld [vmem:[%s1564_s1 + $0x30] sm:$0xff]   ;;  %s1464_s17 = sshll.u32 %s1574_s18, 5  ;;  %vm741_vm3 = vcmask 60416  }
   0xf   : > { %1277 = vmatpush3.bf16.msra.mxu1 %v1329_v2  ;;  %1270 = vmatprep.subr.bf16.mxu0 %v1361_v1  ;;  %443 = vst.msk [vmem:[#allocation2 + $0x10] sm:$0xff] %vm440_vm1, %v1361_v1  ;;  %444 = vst.msk [vmem:[#allocation2 + $0x18] sm:$0xff] %vm440_vm1, %v1361_v1  ;;  %v1332_v7 = vld [vmem:[%s368_s10] sm:$0xff]   ;;  %s1476_s27 = scalar_lea.vmem %s1566_s3, %s1464_s17  ;;  %s416_s11 = scalar_lea.vmem %s1567_s4, %s1464_s17 }
  0x10   : > { %1278 = vmatprep.subr.bf16.mxu1 %v1361_v1  ;;  %1280 = vmatprep.mubr.msk.bf16.mxu1 %vm1362_vm0, %v1361_v1  ;;  %445 = vst.msk [vmem:[#allocation2 + $0x20] sm:$0xff] %vm440_vm1, %v1361_v1  ;;  %446 = vst.msk [vmem:[#allocation2 + $0x28] sm:$0xff] %vm440_vm1, %v1361_v1  ;;  %v1209_v29 = vld [vmem:[%s1565_s2] ss:$0 sm:$0xff]  ;;  %v1213_v30 = vld [vmem:[%s1565_s2 + $0x1] ss:$0 sm:$0xff]  ;;  %s1528_s14 = scalar_lea.vmem %s1568_s5, %s1464_s17 }
  0x11   : > { %447 = vst.msk [vmem:[#allocation2 + $0x30] sm:$0xff] %vm440_vm1, %v1361_v1  ;;  %448 = vst.msk [vmem:[#allocation2 + $0x38] sm:$0xff] %vm440_vm1, %v1361_v1  ;;  %v1223_v54 = vld [vmem:[%s1565_s2 + $0x2] ss:$0 sm:$0xff]  ;;  %v1233_v57 = vld [vmem:[%s1565_s2 + $0x3] ss:$0 sm:$0xff] }
  0x12   : > { %1271 = vmatpush3.bf16.msra.mxu0 %v1330_v3 }
  0x13   : > { %1279 = vmatpush3.bf16.msra.mxu1 %v1331_v4  ;;  %1284 = vmatprep.subr.bf16.mxu0 %v1361_v1 }
  0x14   : > { %1292 = vmatprep.subr.bf16.mxu1 %v1361_v1 }
  0x15   : > { %1273 = vmatmul.mubr.msk.bf16.vlgmr.msra.gmra.mxu0 %vm474_vm2, %v1332_v7  ;;  %v451_v10 = vld [vmem:[#allocation2] sm:$0xff]  ;;  %v452_v18 = vld [vmem:[#allocation2 + $0x8] sm:$0xff] }
  0x16   : > { %1281 = vmatmul.mubr.msk.bf16.vlgmr.msra.gmra.mxu1 %vm474_vm2, %v1332_v7  ;;  %1285 = vmatpush3.bf16.msra.mxu0 %v1333_v5  ;;  %v525_v11 = vld [vmem:[#allocation2 + $0x10] sm:$0xff]  ;;  %v526_v19 = vld [vmem:[#allocation2 + $0x18] sm:$0xff] }
  0x17   : > { %1288 = vmatprep.mubr.msk.bf16.mxu0 %vm1362_vm0, %v1361_v1  ;;  %1286 = vmatprep.subr.bf16.mxu0 %v1361_v1  ;;  %v590_v26 = vld [vmem:[#allocation2 + $0x20] sm:$0xff]  ;;  %v591_v34 = vld [vmem:[#allocation2 + $0x28] sm:$0xff] }
  0x18   : > { %1293 = vmatpush3.bf16.msra.mxu1 %v1335_v6  ;;  %1296 = vmatprep.mubr.msk.bf16.mxu1 %vm1362_vm0, %v1361_v1  ;;  %v655_v27 = vld [vmem:[#allocation2 + $0x30] sm:$0xff]  ;;  %v656_v40 = vld [vmem:[#allocation2 + $0x38] sm:$0xff] }
  0x19   : > { %1294 = vmatprep.subr.bf16.mxu1 %v1361_v1 }
  0x1a   : > { %1287 = vmatpush3.bf16.msra.mxu0 %v1334_v8 }
  0x1c   : > { %1295 = vmatpush3.bf16.msra.mxu1 %v1336_v9 }
  0x1d   : > { %1289 = vmatmul.mubr.msk.bf16.vlgmr.msra.gmra.mxu0 %vm474_vm2, %v1332_v7 }
  0x1f   : > { %1297 = vmatmul.mubr.msk.bf16.vlgmr.msra.gmra.mxu1 %vm474_vm2, %v1332_v7 }
  0xd5   : > { %v512_v12 = vpop.f32.mrf.mxu0 }
  0xd6   : > { %v578_v13 = vpop.f32.mrf.mxu1  ;;  %v519_v14 = vadd.f32 %v512_v12, %v451_v10 }
  0xd7   : > { %v585_v15 = vadd.f32 %v578_v13, %v525_v11  ;;  %v1274_v16 = vpop.f32.mrf.mxu0 }
  0xd8   : > { %v1282_v17 = vpop.f32.mrf.mxu1  ;;  %522 = vst.msk [vmem:[#allocation2] sm:$0xff] %vm440_vm1, %v519_v14 }
  0xd9   : > { %587 = vst.msk [vmem:[#allocation2 + $0x10] sm:$0xff] %vm440_vm1, %v585_v15  ;;  %v515_v20 = vpop.f32.mrf.mxu0 }
  0xda   : > { %v581_v21 = vpop.f32.mrf.mxu1  ;;  %v520_v22 = vadd.f32 %v515_v20, %v452_v18 }
  0xdb   : > { %v586_v23 = vadd.f32 %v581_v21, %v526_v19  ;;  %v1275_v24 = vpop.f32.mrf.mxu0 }
  0xdc   : > { %v1283_v25 = vpop.f32.mrf.mxu1  ;;  %523 = vst.msk [vmem:[#allocation2 + $0x8] sm:$0xff] %vm440_vm1, %v520_v22 }
  0xdd   : > { %588 = vst.msk [vmem:[#allocation2 + $0x18] sm:$0xff] %vm440_vm1, %v586_v23  ;;  %v643_v28 = vpop.f32.mrf.mxu0 }
  0xde   : > { %v650_v31 = vadd.f32 %v643_v28, %v590_v26 }
  0xdf   : > { %v708_v32 = vpop.f32.mrf.mxu1  ;;  %v1290_v33 = vpop.f32.mrf.mxu0  ;;  %v722_v36 = vld [vmem:[#allocation2] sm:$0xff] }
  0xe0   : > { %v715_v35 = vadd.f32 %v708_v32, %v655_v27  ;;  %v760_v37 = vld [vmem:[#allocation2 + $0x10] sm:$0xff]  ;;  %652 = vst.msk [vmem:[#allocation2 + $0x20] sm:$0xff] %vm440_vm1, %v650_v31  ;;  %v731_v38 = vadd.f32 %v1209_v29, %v722_v36 }
  0xe1   : > { %v1298_v39 = vpop.f32.mrf.mxu1  ;;  %v770_v41 = vadd.f32 %v1213_v30, %v760_v37  ;;  %v646_v42 = vpop.f32.mrf.mxu0 }
  0xe2   : > { %717 = vst.msk [vmem:[#allocation2 + $0x30] sm:$0xff] %vm440_vm1, %v715_v35  ;;  %v651_v43 = vadd.f32 %v646_v42, %v591_v34  ;;  %v1248_v44 = vpack.c.bf16 %v731_v38, %v731_v38 }
  0xe3   : > { %v711_v45 = vpop.f32.mrf.mxu1  ;;  %v1250_v46 = vpack.c.bf16 %v770_v41, %v770_v41  ;;  %v1291_v47 = vpop.f32.mrf.mxu0  ;;  %v723_v49 = vld [vmem:[#allocation2 + $0x8] sm:$0xff] }
  0xe4   : > { %v716_v48 = vadd.f32 %v711_v45, %v656_v40  ;;  %v761_v50 = vld [vmem:[#allocation2 + $0x18] sm:$0xff]  ;;  %653 = vst.msk [vmem:[#allocation2 + $0x28] sm:$0xff] %vm440_vm1, %v651_v43  ;;  %752 = vrot.lane.b32.xlu1 %v1248_v44, %s1363_s28  ;;  %744 = vrot.lane.b32.xlu0 %v1248_v44, %s1364_s29  ;;  %v732_v51 = vadd.f32 %v1209_v29, %v723_v49 }
  0xe5   : > { %742 = vst.msk [vmem:[%s1476_s27] sm:$0xf] %vm741_vm3, %v1248_v44  ;;  %1216 = vst.msk [vmem:[%s1476_s27 + $0x8] sm:$0xf] %vm741_vm3, %v1250_v46  ;;  %v1299_v52 = vpop.f32.mrf.mxu1  ;;  %v771_v53 = vadd.f32 %v1213_v30, %v761_v50 }
  0xe6   : > { %718 = vst.msk [vmem:[#allocation2 + $0x38] sm:$0xff] %vm440_vm1, %v716_v48  ;;  %v1249_v55 = vpack.c.bf16 %v732_v51, %v732_v51 }
  0xe7   : > { %v1251_v56 = vpack.c.bf16 %v771_v53, %v771_v53  ;;  %v801_v58 = vld [vmem:[#allocation2 + $0x20] sm:$0xff] }
  0xe8   : > { %783 = vrot.lane.b32.xlu0 %v1250_v46, %s1364_s29  ;;  %754 = vrot.lane.b32.xlu1 %v1249_v55, %s1363_s28  ;;  %743 = vst.msk [vmem:[%s1476_s27 + $0x4] sm:$0xf] %vm741_vm3, %v1249_v55  ;;  %v811_v59 = vadd.f32 %v1223_v54, %v801_v58 }
  0xe9   : > { %1217 = vst.msk [vmem:[%s1476_s27 + $0xc] sm:$0xf] %vm741_vm3, %v1251_v56  ;;  %v842_v60 = vld [vmem:[#allocation2 + $0x30] sm:$0xff] }
  0xea   : > { %v852_v61 = vadd.f32 %v1233_v57, %v842_v60  ;;  %v1252_v62 = vpack.c.bf16 %v811_v59, %v811_v59 }
  0xeb   : > { %v802_v63 = vld [vmem:[#allocation2 + $0x28] sm:$0xff] }
  0xec   : > { %v1254_v0 = vpack.c.bf16 %v852_v61, %v852_v61  ;;  %792 = vrot.lane.b32.xlu0 %v1250_v46, %s1363_s28  ;;  %785 = vrot.lane.b32.xlu1 %v1251_v56, %s1364_s29  ;;  %1226 = vst.msk [vmem:[%s1476_s27 + $0x10] sm:$0xf] %vm741_vm3, %v1252_v62  ;;  %v812_v1 = vadd.f32 %v1223_v54, %v802_v63 }
  0xed   : > { %v843_v2 = vld [vmem:[#allocation2 + $0x38] sm:$0xff] }
  0xee   : > { %1236 = vst.msk [vmem:[%s1476_s27 + $0x18] sm:$0xf] %vm741_vm3, %v1254_v0  ;;  %v853_v3 = vadd.f32 %v1233_v57, %v843_v2  ;;  %v1253_v4 = vpack.c.bf16 %v812_v1, %v812_v1 }
  0xf0   : > { %v1255_v5 = vpack.c.bf16 %v853_v3, %v853_v3  ;;  %794 = vrot.lane.b32.xlu1 %v1251_v56, %s1363_s28  ;;  %746 = vrot.lane.b32.xlu0 %v1249_v55, %s1364_s29  ;;  %1227 = vst.msk [vmem:[%s1476_s27 + $0x14] sm:$0xf] %vm741_vm3, %v1253_v4 }
  0xf2   : > { %1237 = vst.msk [vmem:[%s1476_s27 + $0x1c] sm:$0xf] %vm741_vm3, %v1255_v5 }
  0xf4   : > { %824 = vrot.lane.b32.xlu0 %v1252_v62, %s1364_s29  ;;  %826 = vrot.lane.b32.xlu1 %v1253_v4, %s1364_s29 }
  0xf8   : > { %833 = vrot.lane.b32.xlu0 %v1252_v62, %s1363_s28  ;;  %835 = vrot.lane.b32.xlu1 %v1253_v4, %s1363_s28 }
  0xfc   : > { %865 = vrot.lane.b32.xlu0 %v1254_v0, %s1364_s29  ;;  %867 = vrot.lane.b32.xlu1 %v1255_v5, %s1364_s29 }
 0x100   : > { %874 = vrot.lane.b32.xlu0 %v1254_v0, %s1363_s28  ;;  %876 = vrot.lane.b32.xlu1 %v1255_v5, %s1363_s28 }
 0x156   : > { %v753_v6 = vpop.permute.xlu1 %752  ;;  %v745_v7 = vpop.permute.xlu0 %744 }
 0x157   : > { %758 = vst.msk [vmem:[%s1528_s14] sm:$0xf] %vm741_vm3, %v753_v6  ;;  %750 = vst.msk [vmem:[%s416_s11] sm:$0xf] %vm741_vm3, %v745_v7 }
 0x15a   : > { %v784_v8 = vpop.permute.xlu0 %783  ;;  %v755_v9 = vpop.permute.xlu1 %754 }
 0x15b   : > { %1218 = vst.msk [vmem:[%s416_s11 + $0x8] sm:$0xf] %vm741_vm3, %v784_v8  ;;  %759 = vst.msk [vmem:[%s1528_s14 + $0x4] sm:$0xf] %vm741_vm3, %v755_v9 }
 0x15e   : > { %v793_v10 = vpop.permute.xlu0 %792  ;;  %v786_v11 = vpop.permute.xlu1 %785 }
 0x15f   : > { %1220 = vst.msk [vmem:[%s1528_s14 + $0x8] sm:$0xf] %vm741_vm3, %v793_v10  ;;  %1219 = vst.msk [vmem:[%s416_s11 + $0xc] sm:$0xf] %vm741_vm3, %v786_v11 }
 0x162   : > { %v795_v12 = vpop.permute.xlu1 %794  ;;  %v747_v13 = vpop.permute.xlu0 %746 }
 0x163   : > { %1221 = vst.msk [vmem:[%s1528_s14 + $0xc] sm:$0xf] %vm741_vm3, %v795_v12  ;;  %751 = vst.msk [vmem:[%s416_s11 + $0x4] sm:$0xf] %vm741_vm3, %v747_v13 }
 0x166   : > { %v825_v14 = vpop.permute.xlu0 %824  ;;  %v827_v15 = vpop.permute.xlu1 %826 }
 0x167   : > { %1228 = vst.msk [vmem:[%s416_s11 + $0x10] sm:$0xf] %vm741_vm3, %v825_v14  ;;  %1229 = vst.msk [vmem:[%s416_s11 + $0x14] sm:$0xf] %vm741_vm3, %v827_v15 }
 0x16a   : > { %v834_v16 = vpop.permute.xlu0 %833  ;;  %v836_v17 = vpop.permute.xlu1 %835 }
 0x16b   : > { %1230 = vst.msk [vmem:[%s1528_s14 + $0x10] sm:$0xf] %vm741_vm3, %v834_v16  ;;  %1231 = vst.msk [vmem:[%s1528_s14 + $0x14] sm:$0xf] %vm741_vm3, %v836_v17 }
 0x16e   : > { %v866_v18 = vpop.permute.xlu0 %865  ;;  %v868_v19 = vpop.permute.xlu1 %867 }
 0x16f   : > { %1238 = vst.msk [vmem:[%s416_s11 + $0x18] sm:$0xf] %vm741_vm3, %v866_v18  ;;  %1239 = vst.msk [vmem:[%s416_s11 + $0x1c] sm:$0xf] %vm741_vm3, %v868_v19 }
 0x172   : > { %v875_v20 = vpop.permute.xlu0 %874  ;;  %v877_v21 = vpop.permute.xlu1 %876 }
 0x173   : > { %1240 = vst.msk [vmem:[%s1528_s14 + $0x18] sm:$0xf] %vm741_vm3, %v875_v20  ;;  %1241 = vst.msk [vmem:[%s1528_s14 + $0x1c] sm:$0xf] %vm741_vm3, %v877_v21 }
 0x174 PF: > { %s16_s20 = sadd.s32 1, %s1359_s20   ;;  %s1569_s18 = smov %s1355_s19 }
 0x175   : > { %p13_p5 = scmp.ge.s32.totalorder %s16_s20, 4   ;;  %s1570_s19 = smov %s1572_s21 }
 0x177   :  { %15 = sbr.rel (!%p13_p5) target bundleno = 2 (0x2), region = 118 }

// kernel: _forward.4
= control target key start
LH: loop header
LB: loop body
LE: loop exit
PB: predicated region body
PF: predicated region fallthrough
CT: control target
= control target key end

     0   :  { %s1028_s12 = smov 0   ;;  %s1030_s13 = smov 0   ;;  %s1096_s0 = inlined_call_operand.vmem [shape: bf16[2,4,16,8], index: 0, kind: input, shape index: {}]   ;;  %s1097_s1 = inlined_call_operand.vmem [shape: bf16[2,4,16,8], index: 1, kind: input, shape index: {}]   ;;  %s1098_s2 = inlined_call_operand.vmem [shape: bf16[2,4,16,8], index: 2, kind: input, shape index: {}]   ;;  %s1099_s3 = inlined_call_operand.vmem [shape: bf16[2,4,16,8], index: 3, kind: output, shape index: {}]  }
   0x1   :  { %s1032_s14 = smov 0   ;;  %s1034_s15 = smov 0  }
   0x2   :  { %s1036_s16 = smov 0  }
   0x3 LB: > { %s28_s17 = sadd.s32 1, %s996_s14  ;;  %s32_s18 = sadd.s32 1, %s1000_s15  ;;  %s1004_s16 = sphi %s1036_s16, %s13_s16   ;;  %s1000_s15 = sphi %s1034_s15, %s1103_s15   ;;  %s996_s14 = sphi %s1032_s14, %s1102_s14   ;;  %s992_s13 = sphi %s1030_s13, %s1101_s13   ;;  %s988_s12 = sphi %s1028_s12, %s1100_s12  }
   0x4   : > { %p30_p0 = scmp.ge.s32.totalorder %s28_s17, 4  ;;  %p861_p1 = scmp.ge.s32.totalorder %s1004_s16, 1 }
   0x5   : > { %p205_p2 = scmp.lt.s32.totalorder %s1004_s16, 9 }
   0x6   : > { %s1105_s17 = smov (%p30_p0, %s28_s17), 0  ;;  %s1107_s18 = smov (!%p30_p0, %s32_s18), %s1000_s15 }
   0x7   : > { %p206_p3 = pnand %p861_p1, %p205_p2  ;;  %p34_p4 = scmp.ge.s32.totalorder %s1107_s18, 2 }
   0x8   : > { %p264_p5 = scmp.lt.s32.totalorder (!%p206_p3), %s992_s13, 1  ;;  %p266_p6 = scmp.lt.s32.totalorder (!%p206_p3), %s988_s12, 3 }
   0x9   : > { %s1109_s18 = smov (%p34_p4, %s1107_s18), 0  ;;  %209 = sbr.rel (%p206_p3) target bundleno = 591 (0x24f), region = 32 }
   0xe   : > { %v1006_v0 = vmov 0.0   ;;  %vm1007_vm0 = vmmov 0   ;;  %s1111_s13 = smov (!%p264_p5, %s992_s13), 1  ;;  %s1113_s12 = smov (!%p266_p6, %s988_s12), 3  ;;  %vm500_vm1 = vcmask 64512   ;;  %v548_v4 = vlaneseq }
   0xf   : > { %897 = vmatprep.subr.bf16.mxu0 %v1006_v0  ;;  %899 = vmatprep.mubr.msk.bf16.mxu0 %vm1007_vm0, %v1006_v0  ;;  %s863_s19 = sshll.u32 %s1111_s13, 3  ;;  %s862_s20 = sshll.u32 %s1113_s12, 1  ;;  %vm562_vm3 = vcmask 130048   ;;  %vm666_vm5 = vcmask 60416  }
  0x10   : > { %903 = vmatprep.subr.bf16.mxu1 %v1006_v0  ;;  %905 = vmatprep.mubr.msk.bf16.mxu1 %vm1007_vm0, %v1006_v0  ;;  %s273_s21 = sadd.s32 %s863_s19, %s862_s20  ;;  %v549_v5 = vshrl.u32 %v548_v4, 7  ;;  %v555_v6 = vand.u32 127, %v548_v4 }
  0x11   : > { %s1058_s22 = sshll.u32 %s273_s21, 2 }
  0x12   : > { %s285_s25 = scalar_lea.vmem %s1097_s1, %s1058_s22  ;;  %s275_s28 = scalar_lea.vmem %s1096_s0, %s1058_s22  ;;  %vm558_vm2 = vcmp.ge.s32.totalorder %v549_v5, %v555_v6  ;;  %v550_v7 = vadd.s32 8, %v549_v5 }
  0x13   : > { %v951_v1 = vld [vmem:[%s285_s25] sm:$0xff]   ;;  %s294_s4 = scalar_lea.vmem %s1098_s2, %s1058_s22  ;;  %s307_s7 = scalar_lea.vmem %s1099_s3, %s1058_s22 }
  0x14   : > { %v505_v2 = vsel %vm500_vm1, %v951_v1, 0  ;;  %v952_v3 = vld [vmem:[%s275_s28] sm:$0xff]   ;;  %vm559_vm4 = vcmp.ge.s32.totalorder %v550_v7, %v555_v6 }
  0x15   : > { %898 = vmatpush3.bf16.xpose.msra.mxu0 %v505_v2  ;;  %v953_v16 = vld [vmem:[%s294_s4] sm:$0xff]  }
  0x16   : > { %904 = vmatpush3.bf16.msra.mxu1 %v953_v16 }
  0x1c   : > { %900 = vmatmul.mubr.msk.bf16.vlgmr.msra.gmra.mxu0 %vm500_vm1, %v952_v3 }
  0xdc   : > { %v541_v8 = vpop.f32.mrf.mxu0 }
  0xdd   : > { %v560_v9 = vsel %vm558_vm2, %v541_v8, -1e+30 }
  0xde   : > { %v901_v10 = vpop.f32.mrf.mxu0  ;;  %v563_v11 = vsel %vm562_vm3, %v560_v9, -inf }
  0xdf   : > { %564 = vmax.xlane.f32.xlu0 %v563_v11 }
  0xe0   : > { %v544_v12 = vpop.f32.mrf.mxu0 }
  0xe1   : > { %v561_v13 = vsel %vm559_vm4, %v544_v12, -1e+30 }
  0xe2   : > { %v902_v14 = vpop.f32.mrf.mxu0  ;;  %v566_v15 = vsel %vm562_vm3, %v561_v13, -inf }
  0xe3   : > { %567 = vmax.xlane.f32.xlu0 %v566_v15 }
 0x168   : > { %v565_v17 = vpop.xlane.xlu0 %564 }
 0x169   : > { %v569_v18 = vmax.f32 %v565_v17, -1e+30 }
 0x16b   : > { %v577_v19 = vsub.f32 %v560_v9, %v569_v18  ;;  %v571_v30 = vsub.f32 -1e+30, %v569_v18 }
 0x16c   : > { %v568_v20 = vpop.xlane.xlu0 %567 }
 0x16d   : > { %v579_v21 = vmul.f32 1.442695, %v577_v19  ;;  %v570_v22 = vmax.f32 %v568_v20, -1e+30  ;;  %v573_v31 = vmul.f32 1.442695, %v571_v30 }
 0x16f   : > { %v578_v23 = vsub.f32 %v561_v13, %v570_v22  ;;  %954 = vpow2.f32 %v579_v21  ;;  %v572_v32 = vsub.f32 -1e+30, %v570_v22 }
 0x171   : > { %v581_v24 = vmul.f32 1.442695, %v578_v23  ;;  %v575_v33 = vmul.f32 1.442695, %v572_v32 }
 0x173   : > { %956 = vpow2.f32 %v581_v24 }
 0x174   : > { %958 = vpow2.f32 %v573_v31 }
 0x175   : > { %960 = vpow2.f32 %v575_v33 }
 0x17c   : > { %v955_v25 = vpop.eup %954 }
 0x17d   : > { %v585_v26 = vsel %vm562_vm3, %v955_v25, 0.0 }
 0x17e   : > { %586 = vadd.xlane.f32.xlu1 %v585_v26 }
 0x180   : > { %v957_v27 = vpop.eup %956 }
 0x181   : > { %v588_v28 = vsel %vm562_vm3, %v957_v27, 0.0  ;;  %v595_v29 = vpack.c.bf16 %v957_v27, %v955_v25  ;;  %v959_v34 = vpop.eup %958 }
 0x182   : > { %589 = vadd.xlane.f32.xlu1 %v588_v28  ;;  %v583_v36 = vmul.f32 0.0, %v959_v34  ;;  %v961_v37 = vpop.eup %960 }
 0x183   : > { %906 = vmatmul.mubr.msk.bf16.vlgmr.msra.gmra.mxu1 %vm562_vm3, %v595_v29  ;;  %v584_v40 = vmul.f32 0.0, %v961_v37 }
 0x207   : > { %v587_v35 = vpop.xlane.xlu1 %586 }
 0x208   : > { %v591_v38 = vadd.f32 %v587_v35, %v583_v36 }
 0x20a   : > { %962 = vrcp.f32 %v591_v38 }
 0x20b   : > { %v590_v39 = vpop.xlane.xlu1 %589 }
 0x20c   : > { %v592_v41 = vadd.f32 %v590_v39, %v584_v40 }
 0x20e   : > { %964 = vrcp.f32 %v592_v41 }
 0x217   : > { %v963_v42 = vpop.eup %962 }
 0x218   : > { %v650_v43 = vmul.f32 %v963_v42, %v591_v38 }
 0x21a   : > { %v652_v45 = vsub.f32 2.0, %v650_v43 }
 0x21b   : > { %v965_v44 = vpop.eup %964 }
 0x21c   : > { %v651_v46 = vmul.f32 %v965_v44, %v592_v41  ;;  %v654_v50 = vmul.f32 %v963_v42, %v652_v45 }
 0x21e   : > { %v653_v48 = vsub.f32 2.0, %v651_v46 }
 0x220   : > { %v655_v56 = vmul.f32 %v965_v44, %v653_v48 }
 0x243   : > { %v639_v47 = vpop.f32.mrf.mxu1 }
 0x244   : > { %v646_v49 = vadd.f32 %v639_v47, %v583_v36 }
 0x245   : > { %v907_v51 = vpop.f32.mrf.mxu1 }
 0x246   : > { %v656_v52 = vmul.f32 %v654_v50, %v646_v49 }
 0x247   : > { %v642_v53 = vpop.f32.mrf.mxu1 }
 0x248   : > { %v891_v54 = vpack.c.bf16 %v656_v52, %v656_v52  ;;  %v647_v55 = vadd.f32 %v642_v53, %v584_v40 }
 0x249   : > { %v908_v57 = vpop.f32.mrf.mxu1 }
 0x24a   : > { %667 = vst.msk [vmem:[%s307_s7] sm:$0xf] %vm666_vm5, %v891_v54  ;;  %v657_v58 = vmul.f32 %v655_v56, %v647_v55 }
 0x24c   : > { %v892_v59 = vpack.c.bf16 %v657_v58, %v657_v58 }
 0x24e   : > { %668 = vst.msk [vmem:[%s307_s7 + $0x4] sm:$0xf] %vm666_vm5, %v892_v59 }
 0x24f PF: > { %s13_s16 = sadd.s32 1, %s1004_s16   ;;  %s1100_s12 = smov %s996_s14 }
 0x250   : > { %p10_p7 = scmp.ge.s32.totalorder %s13_s16, 10   ;;  %s1101_s13 = smov %s1000_s15 }
 0x251   : > { %s1102_s14 = smov %s1105_s17  ;;  %s1103_s15 = smov %s1109_s18 }
 0x252   :  { %12 = sbr.rel (!%p10_p7) target bundleno = 3 (0x3), region = 90 }

</bundles_post_ra>
